<compile_context>
chip_gen: v7x
topology: tpu7x:2x2x1
jax: 0.10.0
libtpu: 0.0.40
codegen_flags: <defaults>
</compile_context>

<pallas_src>
import functools

import jax
import jax.numpy as jnp
from jax import lax
from jax.experimental import pallas as pl
from jax.experimental.pallas import tpu as pltpu


def _round_up(x: int, m: int) -> int:
    return (x + m - 1) // m * m


# ----------------------------- Pallas kernels ------------------------------ #

def _conv_stats_kernel(x_ref, w_ref, b_ref, y_ref, sum_ref, ssq_ref,
                       patches_ref, *, K: int, H: int, W: int):
    """Conv (single im2col matmul) + per-image BN partial statistics.

    x_ref:       (1, Hp, Wp, Cin)  bf16, pre-padded input for one image
    w_ref:       (K*K*Cin, Cp)     bf16, conv weights (Cout zero-padded to Cp)
    b_ref:       (1, Cp)           f32,  conv bias (zero-padded)
    y_ref:       (1, H*W, Cp)      bf16, conv output, channels on the lane axis
    sum_ref:     (1, 1, Cp)        f32,  per-image sum over H*W    (partial)
    ssq_ref:     (1, 1, Cp)        f32,  per-image sum of squares  (partial)
    patches_ref: (H, W, K*K*Cin)   bf16 VMEM scratch (im2col staging buffer)
    """
    Cin = x_ref.shape[-1]
    x = x_ref[0]                                          # (Hp, Wp, Cin)

    # Stage the im2col patches once, then issue a single big MXU matmul with
    # contraction K*K*Cin and N = Cp (128-padded) instead of K*K tiny matmuls.
    for i in range(K):
        for j in range(K):
            t = i * K + j
            patches_ref[:, :, t * Cin:(t + 1) * Cin] = x[i:i + H, j:j + W, :]

    patches = patches_ref[...].reshape(H * W, K * K * Cin)          # bf16
    acc = jnp.dot(patches, w_ref[...],
                  preferred_element_type=jnp.float32)               # (H*W, Cp) f32
    acc = acc + b_ref[...]                                          # bias broadcast

    # Per-image partial statistics (reduced over the batch in the JAX glue), so
    # the batch grid axis stays "parallel" -- no cross-step resident accumulator.
    sum_ref[0] = jnp.sum(acc, axis=0, keepdims=True)
    ssq_ref[0] = jnp.sum(acc * acc, axis=0, keepdims=True)

    y_ref[0] = acc.astype(y_ref.dtype)                              # bf16 intermediate


def _bn_relu_kernel(y_ref, scale_ref, shift_ref, o_ref):
    """Elementwise y*scale + shift, ReLU.  Channels (Cp, lane-dense) last."""
    y = y_ref[0].astype(jnp.float32)                  # (H*W, Cp)
    o = y * scale_ref[...] + shift_ref[...]           # (1, Cp) broadcasts over rows
    o_ref[0] = jnp.maximum(o, 0.0)


# ------------------------------- Wrapper ----------------------------------- #

@jax.jit
def cnbr_forward(x_nchw, weight, bias, gamma, beta, eps=1e-5):
    """CNBR forward (training-mode BatchNorm batch statistics).

    x_nchw: (N, Cin, H, W); weight: (Cout, Cin, K, K)  (PyTorch layouts).
    """
    N, Cin, H, W = x_nchw.shape
    Cout, _, K, _ = weight.shape
    pad = (K - 1) // 2
    Hp, Wp = H + 2 * pad, W + 2 * pad
    HW = H * W
    KKC = K * K * Cin
    Cp = _round_up(Cout, 128)          # lane-dense channel dim, sliced off at the end

    # Boundary glue (fused by XLA into one pass): NCHW -> NHWC, spatial pad, bf16.
    # TODO(synk): for very large inputs, fold the halo/pad into the kernel
    # (masked edge taps) to avoid this extra HBM pass over the input.
    xp = jnp.pad(jnp.transpose(x_nchw, (0, 2, 3, 1)),
                 ((0, 0), (pad, pad), (pad, pad), (0, 0))).astype(jnp.bfloat16)

    # Weights -> (K*K*Cin, Cp) bf16, flattened in (i, j, cin) order to match the
    # in-kernel im2col; bias -> (1, Cp) f32. Padded channels are all-zero.
    w2 = jnp.transpose(weight, (2, 3, 1, 0)).reshape(KKC, Cout)
    w_p = jnp.pad(w2, ((0, 0), (0, Cp - Cout))).astype(jnp.bfloat16)
    b_p = jnp.pad(bias, (0, Cp - Cout)).reshape(1, Cp).astype(jnp.float32)

    # ---- kernel 1: conv (one matmul per image) + per-image BN partials ----
    y, psum, pssq = pl.pallas_call(
        functools.partial(_conv_stats_kernel, K=K, H=H, W=W),
        out_shape=(
            jax.ShapeDtypeStruct((N, HW, Cp), jnp.bfloat16),
            jax.ShapeDtypeStruct((N, 1, Cp), jnp.float32),
            jax.ShapeDtypeStruct((N, 1, Cp), jnp.float32),
        ),
        grid_spec=pltpu.PrefetchScalarGridSpec(
            num_scalar_prefetch=0,
            grid=(N,),
            in_specs=[
                pl.BlockSpec((1, Hp, Wp, Cin), lambda n: (n, 0, 0, 0)),
                pl.BlockSpec((KKC, Cp), lambda n: (0, 0)),
                pl.BlockSpec((1, Cp), lambda n: (0, 0)),
            ],
            out_specs=(
                pl.BlockSpec((1, HW, Cp), lambda n: (n, 0, 0)),
                pl.BlockSpec((1, 1, Cp), lambda n: (n, 0, 0)),
                pl.BlockSpec((1, 1, Cp), lambda n: (n, 0, 0)),
            ),
            scratch_shapes=[pltpu.VMEM((H, W, KKC), jnp.bfloat16)],
        ),
        compiler_params=pltpu.CompilerParams(
            dimension_semantics=("parallel",),        # per-step partial stats => safe
            vmem_limit_bytes=48 * 1024 * 1024,        # explicit budget, fits v7x 64 MiB
        ),
    )(xp, w_p, b_p)
    # TODO(synk): for large H*W (e.g. 224x224x64) tile spatially over rows with a
    # halo (manual DMA) so per-step blocks fit v7x's 64 MiB VMEM; whole-image
    # blocks are fine at these sizes.

    # ---- glue: batch statistics -> per-channel scale/shift (training-mode BN) ----
    count = jnp.float32(N * H * W)
    csum = jnp.sum(psum[:, 0, :], axis=0)                 # (Cp,)
    cssq = jnp.sum(pssq[:, 0, :], axis=0)
    mean = csum / count
    # TODO(synk): E[x^2]-E[x]^2 can cancel when |mean| >> std at large N*H*W; use
    # a centered second pass / Welford accumulation for big problems.
    var = jnp.maximum(cssq / count - mean * mean, 0.0)    # biased variance (train mode)
    inv_std = lax.rsqrt(var + eps)
    gamma_p = jnp.pad(gamma.astype(jnp.float32), (0, Cp - Cout))
    beta_p = jnp.pad(beta.astype(jnp.float32), (0, Cp - Cout))
    scale = (gamma_p * inv_std).reshape(1, Cp)
    shift = (beta_p - mean * gamma_p * inv_std).reshape(1, Cp)

    # ---- kernel 2: elementwise BN-apply + ReLU (lane-dense, parallel over N) ----
    out = pl.pallas_call(
        _bn_relu_kernel,
        out_shape=jax.ShapeDtypeStruct((N, HW, Cp), jnp.float32),
        grid_spec=pltpu.PrefetchScalarGridSpec(
            num_scalar_prefetch=0,
            grid=(N,),
            in_specs=[
                pl.BlockSpec((1, HW, Cp), lambda n: (n, 0, 0)),
                pl.BlockSpec((1, Cp), lambda n: (0, 0)),
                pl.BlockSpec((1, Cp), lambda n: (0, 0)),
            ],
            out_specs=pl.BlockSpec((1, HW, Cp), lambda n: (n, 0, 0)),
        ),
        compiler_params=pltpu.CompilerParams(
            dimension_semantics=("parallel",),
            vmem_limit_bytes=48 * 1024 * 1024,
        ),
    )(y, scale, shift)

    # Back to PyTorch NCHW.  Only the Cout real channels (e.g. 8 of 128) are
    # sliced + transposed by XLA, so this last pass touches few bytes.
    out_nhwc = out.reshape(N, H, W, Cp)[:, :, :, :Cout]
    return jnp.transpose(out_nhwc, (0, 3, 1, 2))


# ------------------------------ Reference ---------------------------------- #

def cnbr_reference(x_nchw, weight, bias, gamma, beta, eps=1e-5):
    x = jnp.transpose(x_nchw, (0, 2, 3, 1)).astype(jnp.float32)
    w_hwio = jnp.transpose(weight, (2, 3, 1, 0)).astype(jnp.float32)
    y = lax.conv_general_dilated(
        x, w_hwio, window_strides=(1, 1), padding="SAME",
        dimension_numbers=("NHWC", "HWIO", "NHWC"),
        precision=lax.Precision.HIGHEST)
    y = y + bias.reshape(1, 1, 1, -1)
    mean = jnp.mean(y, axis=(0, 1, 2))
    var = jnp.mean((y - mean) ** 2, axis=(0, 1, 2))
    yn = (y - mean) * lax.rsqrt(var + eps) * gamma + beta
    out = jnp.maximum(yn, 0.0)
    return jnp.transpose(out, (0, 3, 1, 2))


# --------------------------------- Main ------------------------------------ #

if __name__ == "__main__":
    N, Cin, H, W = 2, 4, 16, 16
    Cout, K = 8, 3

    key = jax.random.PRNGKey(0)
    k_x, k_w, k_b, k_g, k_be = jax.random.split(key, 5)

    x = jax.random.normal(k_x, (N, Cin, H, W), jnp.float32)
    # Deterministic parameter init (shapes match nn.Conv2d / nn.BatchNorm2d).
    fan_in = Cin * K * K
    bound = 1.0 / (fan_in ** 0.5)
    weight = jax.random.uniform(k_w, (Cout, Cin, K, K), jnp.float32, -bound, bound)
    bias = jax.random.uniform(k_b, (Cout,), jnp.float32, -bound, bound)
    gamma = 1.0 + 0.1 * jax.random.normal(k_g, (Cout,), jnp.float32)
    beta = 0.1 * jax.random.normal(k_be, (Cout,), jnp.float32)

    out = cnbr_forward(x, weight, bias, gamma, beta)
    out = jax.block_until_ready(out)

    ref = cnbr_reference(x, weight, bias, gamma, beta)
    assert out.shape == (N, Cout, H, W), out.shape
    # bf16 MXU operands + bf16 conv intermediate give ~1e-2-scale abs error on
    # the O(1) normalized outputs; 8e-2 keeps a comfortable margin.
    err = float(jnp.max(jnp.abs(out - ref)))
    assert err < 8e-2, err

    print("KERNEL_OK")
</pallas_src>

<mosaic_0001>
module attributes {stable_mosaic.version = 11 : i64} {
  func.func @_conv_stats_kernel(%arg0: i32, %arg1: memref<1x18x18x4xbf16, #tpu.memory_space<vmem>>, %arg2: memref<36x128xbf16, #tpu.memory_space<vmem>>, %arg3: memref<1x128xf32, #tpu.memory_space<vmem>>, %arg4: memref<1x256x128xbf16, #tpu.memory_space<vmem>>, %arg5: memref<1x1x128xf32, #tpu.memory_space<vmem>>, %arg6: memref<1x1x128xf32, #tpu.memory_space<vmem>>, %arg7: memref<16x16x36xbf16, #tpu.memory_space<vmem>>) attributes {dimension_semantics = [#tpu.dimension_semantics<parallel>], iteration_bounds = array<i64: 2>, scalar_prefetch = 0 : i64, scratch_operands = 1 : i64, tpu.core_type = #tpu.core_type<tc>, window_params = [{transform_indices = @transform_0, window_bounds = array<i64: 1, 18, 18, 4>}, {pipeline_mode = #tpu.pipeline_mode<synchronous>, transform_indices = @transform_1, window_bounds = array<i64: 36, 128>}, {pipeline_mode = #tpu.pipeline_mode<synchronous>, transform_indices = @transform_2, window_bounds = array<i64: 1, 128>}, {transform_indices = @transform_3, window_bounds = array<i64: 1, 256, 128>}, {transform_indices = @transform_4, window_bounds = array<i64: 1, 1, 128>}, {transform_indices = @transform_5, window_bounds = array<i64: 1, 1, 128>}]} {
    %c0 = arith.constant 0 : index
    %c0_0 = arith.constant 0 : index
    %c0_1 = arith.constant 0 : index
    %c0_2 = arith.constant 0 : index
    %0 = vector.load %arg1[%c0, %c0_0, %c0_1, %c0_2] : memref<1x18x18x4xbf16, #tpu.memory_space<vmem>>, vector<1x18x18x4xbf16>
    %1 = vector.shape_cast %0 : vector<1x18x18x4xbf16> to vector<18x18x4xbf16>
    %2 = vector.extract_strided_slice %1 {offsets = [0, 0, 0], sizes = [16, 16, 4], strides = [1, 1, 1]} : vector<18x18x4xbf16> to vector<16x16x4xbf16>
    %c0_3 = arith.constant 0 : index
    %c0_4 = arith.constant 0 : index
    %c0_5 = arith.constant 0 : index
    %3 = vector.load %arg7[%c0_3, %c0_4, %c0_5] : memref<16x16x36xbf16, #tpu.memory_space<vmem>>, vector<16x16x4xbf16>
    tpu.vector_store %arg7[%c0_3, %c0_4, %c0_5], %2 {strides = array<i32>} : memref<16x16x36xbf16, #tpu.memory_space<vmem>>, vector<16x16x4xbf16>,
    %4 = vector.extract_strided_slice %1 {offsets = [0, 1, 0], sizes = [16, 16, 4], strides = [1, 1, 1]} : vector<18x18x4xbf16> to vector<16x16x4xbf16>
    %c0_6 = arith.constant 0 : index
    %c0_7 = arith.constant 0 : index
    %c4 = arith.constant 4 : index
    %5 = vector.load %arg7[%c0_6, %c0_7, %c4] : memref<16x16x36xbf16, #tpu.memory_space<vmem>>, vector<16x16x4xbf16>
    tpu.vector_store %arg7[%c0_6, %c0_7, %c4], %4 {strides = array<i32>} : memref<16x16x36xbf16, #tpu.memory_space<vmem>>, vector<16x16x4xbf16>,
    %6 = vector.extract_strided_slice %1 {offsets = [0, 2, 0], sizes = [16, 16, 4], strides = [1, 1, 1]} : vector<18x18x4xbf16> to vector<16x16x4xbf16>
    %c0_8 = arith.constant 0 : index
    %c0_9 = arith.constant 0 : index
    %c8 = arith.constant 8 : index
    %7 = vector.load %arg7[%c0_8, %c0_9, %c8] : memref<16x16x36xbf16, #tpu.memory_space<vmem>>, vector<16x16x4xbf16>
    tpu.vector_store %arg7[%c0_8, %c0_9, %c8], %6 {strides = array<i32>} : memref<16x16x36xbf16, #tpu.memory_space<vmem>>, vector<16x16x4xbf16>,
    %8 = vector.extract_strided_slice %1 {offsets = [1, 0, 0], sizes = [16, 16, 4], strides = [1, 1, 1]} : vector<18x18x4xbf16> to vector<16x16x4xbf16>
    %c0_10 = arith.constant 0 : index
    %c0_11 = arith.constant 0 : index
    %c12 = arith.constant 12 : index
    %9 = vector.load %arg7[%c0_10, %c0_11, %c12] : memref<16x16x36xbf16, #tpu.memory_space<vmem>>, vector<16x16x4xbf16>
    tpu.vector_store %arg7[%c0_10, %c0_11, %c12], %8 {strides = array<i32>} : memref<16x16x36xbf16, #tpu.memory_space<vmem>>, vector<16x16x4xbf16>,
    %10 = vector.extract_strided_slice %1 {offsets = [1, 1, 0], sizes = [16, 16, 4], strides = [1, 1, 1]} : vector<18x18x4xbf16> to vector<16x16x4xbf16>
    %c0_12 = arith.constant 0 : index
    %c0_13 = arith.constant 0 : index
    %c16 = arith.constant 16 : index
    %11 = vector.load %arg7[%c0_12, %c0_13, %c16] : memref<16x16x36xbf16, #tpu.memory_space<vmem>>, vector<16x16x4xbf16>
    tpu.vector_store %arg7[%c0_12, %c0_13, %c16], %10 {strides = array<i32>} : memref<16x16x36xbf16, #tpu.memory_space<vmem>>, vector<16x16x4xbf16>,
    %12 = vector.extract_strided_slice %1 {offsets = [1, 2, 0], sizes = [16, 16, 4], strides = [1, 1, 1]} : vector<18x18x4xbf16> to vector<16x16x4xbf16>
    %c0_14 = arith.constant 0 : index
    %c0_15 = arith.constant 0 : index
    %c20 = arith.constant 20 : index
    %13 = vector.load %arg7[%c0_14, %c0_15, %c20] : memref<16x16x36xbf16, #tpu.memory_space<vmem>>, vector<16x16x4xbf16>
    tpu.vector_store %arg7[%c0_14, %c0_15, %c20], %12 {strides = array<i32>} : memref<16x16x36xbf16, #tpu.memory_space<vmem>>, vector<16x16x4xbf16>,
    %14 = vector.extract_strided_slice %1 {offsets = [2, 0, 0], sizes = [16, 16, 4], strides = [1, 1, 1]} : vector<18x18x4xbf16> to vector<16x16x4xbf16>
    %c0_16 = arith.constant 0 : index
    %c0_17 = arith.constant 0 : index
    %c24 = arith.constant 24 : index
    %15 = vector.load %arg7[%c0_16, %c0_17, %c24] : memref<16x16x36xbf16, #tpu.memory_space<vmem>>, vector<16x16x4xbf16>
    tpu.vector_store %arg7[%c0_16, %c0_17, %c24], %14 {strides = array<i32>} : memref<16x16x36xbf16, #tpu.memory_space<vmem>>, vector<16x16x4xbf16>,
    %16 = vector.extract_strided_slice %1 {offsets = [2, 1, 0], sizes = [16, 16, 4], strides = [1, 1, 1]} : vector<18x18x4xbf16> to vector<16x16x4xbf16>
    %c0_18 = arith.constant 0 : index
    %c0_19 = arith.constant 0 : index
    %c28 = arith.constant 28 : index
    %17 = vector.load %arg7[%c0_18, %c0_19, %c28] : memref<16x16x36xbf16, #tpu.memory_space<vmem>>, vector<16x16x4xbf16>
    tpu.vector_store %arg7[%c0_18, %c0_19, %c28], %16 {strides = array<i32>} : memref<16x16x36xbf16, #tpu.memory_space<vmem>>, vector<16x16x4xbf16>,
    %18 = vector.extract_strided_slice %1 {offsets = [2, 2, 0], sizes = [16, 16, 4], strides = [1, 1, 1]} : vector<18x18x4xbf16> to vector<16x16x4xbf16>
    %c0_20 = arith.constant 0 : index
    %c0_21 = arith.constant 0 : index
    %c32 = arith.constant 32 : index
    %19 = vector.load %arg7[%c0_20, %c0_21, %c32] : memref<16x16x36xbf16, #tpu.memory_space<vmem>>, vector<16x16x4xbf16>
    tpu.vector_store %arg7[%c0_20, %c0_21, %c32], %18 {strides = array<i32>} : memref<16x16x36xbf16, #tpu.memory_space<vmem>>, vector<16x16x4xbf16>,
    %c0_22 = arith.constant 0 : index
    %c0_23 = arith.constant 0 : index
    %c0_24 = arith.constant 0 : index
    %20 = vector.load %arg7[%c0_22, %c0_23, %c0_24] : memref<16x16x36xbf16, #tpu.memory_space<vmem>>, vector<16x16x36xbf16>
    %21 = vector.shape_cast %20 : vector<16x16x36xbf16> to vector<256x36xbf16>
    %c0_25 = arith.constant 0 : index
    %c0_26 = arith.constant 0 : index
    %22 = vector.load %arg2[%c0_25, %c0_26] : memref<36x128xbf16, #tpu.memory_space<vmem>>, vector<36x128xbf16>
    %cst = arith.constant dense<0.000000e+00> : vector<256x128xf32>
    %23 = tpu.matmul %21, %22, %cst {dimension_numbers = #tpu.dot_dimension_numbers<[1], [0], [0], [1], [0, 0, 1, 1], [], []>} : vector<256x36xbf16>, vector<36x128xbf16>, vector<256x128xf32> -> vector<256x128xf32>
    %c0_27 = arith.constant 0 : index
    %c0_28 = arith.constant 0 : index
    %24 = vector.load %arg3[%c0_27, %c0_28] : memref<1x128xf32, #tpu.memory_space<vmem>>, vector<1x128xf32>
    %25 = vector.broadcast %24 : vector<1x128xf32> to vector<256x128xf32>
    %26 = arith.addf %23, %25 : vector<256x128xf32>
    %cst_29 = arith.constant dense<0.000000e+00> : vector<128xf32>
    %27 = vector.multi_reduction <add>, %26, %cst_29 [0] : vector<256x128xf32> to vector<128xf32>
    %28 = vector.shape_cast %27 : vector<128xf32> to vector<1x128xf32>
    %c0_30 = arith.constant 0 : index
    %c0_31 = arith.constant 0 : index
    %c0_32 = arith.constant 0 : index
    %29 = vector.load %arg5[%c0_30, %c0_31, %c0_32] : memref<1x1x128xf32, #tpu.memory_space<vmem>>, vector<1x1x128xf32>
    %30 = vector.shape_cast %29 : vector<1x1x128xf32> to vector<1x128xf32>
    %31 = vector.shape_cast %28 : vector<1x128xf32> to vector<1x1x128xf32>
    tpu.vector_store %arg5[%c0_30, %c0_31, %c0_32], %31 {strides = array<i32>} : memref<1x1x128xf32, #tpu.memory_space<vmem>>, vector<1x1x128xf32>,
    %32 = arith.mulf %26, %26 : vector<256x128xf32>
    %cst_33 = arith.constant dense<0.000000e+00> : vector<128xf32>
    %33 = vector.multi_reduction <add>, %32, %cst_33 [0] : vector<256x128xf32> to vector<128xf32>
    %34 = vector.shape_cast %33 : vector<128xf32> to vector<1x128xf32>
    %c0_34 = arith.constant 0 : index
    %c0_35 = arith.constant 0 : index
    %c0_36 = arith.constant 0 : index
    %35 = vector.load %arg6[%c0_34, %c0_35, %c0_36] : memref<1x1x128xf32, #tpu.memory_space<vmem>>, vector<1x1x128xf32>
    %36 = vector.shape_cast %35 : vector<1x1x128xf32> to vector<1x128xf32>
    %37 = vector.shape_cast %34 : vector<1x128xf32> to vector<1x1x128xf32>
    tpu.vector_store %arg6[%c0_34, %c0_35, %c0_36], %37 {strides = array<i32>} : memref<1x1x128xf32, #tpu.memory_space<vmem>>, vector<1x1x128xf32>,
    %38 = arith.truncf %26 : vector<256x128xf32> to vector<256x128xbf16>
    %c0_37 = arith.constant 0 : index
    %c0_38 = arith.constant 0 : index
    %c0_39 = arith.constant 0 : index
    %39 = vector.load %arg4[%c0_37, %c0_38, %c0_39] : memref<1x256x128xbf16, #tpu.memory_space<vmem>>, vector<1x256x128xbf16>
    %40 = vector.shape_cast %39 : vector<1x256x128xbf16> to vector<256x128xbf16>
    %41 = vector.shape_cast %38 : vector<256x128xbf16> to vector<1x256x128xbf16>
    tpu.vector_store %arg4[%c0_37, %c0_38, %c0_39], %41 {strides = array<i32>} : memref<1x256x128xbf16, #tpu.memory_space<vmem>>, vector<1x256x128xbf16>,
    return
  }
  func.func @transform_0(%arg0: i32) -> (i32, i32, i32, i32) {
    %c0_i32 = arith.constant 0 : i32
    %c0_i32_0 = arith.constant 0 : i32
    %c0_i32_1 = arith.constant 0 : i32
    %c0_i32_2 = arith.constant 0 : i32
    return %arg0, %c0_i32, %c0_i32_0, %c0_i32_1 : i32, i32, i32, i32
  }
  func.func @transform_1(%arg0: i32) -> (i32, i32) {
    %c0_i32 = arith.constant 0 : i32
    %c0_i32_0 = arith.constant 0 : i32
    %c0_i32_1 = arith.constant 0 : i32
    return %c0_i32, %c0_i32_0 : i32, i32
  }
  func.func @transform_2(%arg0: i32) -> (i32, i32) {
    %c0_i32 = arith.constant 0 : i32
    %c0_i32_0 = arith.constant 0 : i32
    %c0_i32_1 = arith.constant 0 : i32
    return %c0_i32, %c0_i32_0 : i32, i32
  }
  func.func @transform_3(%arg0: i32) -> (i32, i32, i32) {
    %c0_i32 = arith.constant 0 : i32
    %c0_i32_0 = arith.constant 0 : i32
    %c0_i32_1 = arith.constant 0 : i32
    return %arg0, %c0_i32, %c0_i32_0 : i32, i32, i32
  }
  func.func @transform_4(%arg0: i32) -> (i32, i32, i32) {
    %c0_i32 = arith.constant 0 : i32
    %c0_i32_0 = arith.constant 0 : i32
    %c0_i32_1 = arith.constant 0 : i32
    return %arg0, %c0_i32, %c0_i32_0 : i32, i32, i32
  }
  func.func @transform_5(%arg0: i32) -> (i32, i32, i32) {
    %c0_i32 = arith.constant 0 : i32
    %c0_i32_0 = arith.constant 0 : i32
    %c0_i32_1 = arith.constant 0 : i32
    return %arg0, %c0_i32, %c0_i32_0 : i32, i32, i32
  }
}

module attributes {stable_mosaic.version = 11 : i64} {
  func.func @_bn_relu_kernel(%arg0: i32, %arg1: memref<1x256x128xbf16, #tpu.memory_space<vmem>>, %arg2: memref<1x128xf32, #tpu.memory_space<vmem>>, %arg3: memref<1x128xf32, #tpu.memory_space<vmem>>, %arg4: memref<1x256x128xf32, #tpu.memory_space<vmem>>) attributes {dimension_semantics = [#tpu.dimension_semantics<parallel>], iteration_bounds = array<i64: 2>, scalar_prefetch = 0 : i64, scratch_operands = 0 : i64, tpu.core_type = #tpu.core_type<tc>, window_params = [{transform_indices = @transform_0, window_bounds = array<i64: 1, 256, 128>}, {pipeline_mode = #tpu.pipeline_mode<synchronous>, transform_indices = @transform_1, window_bounds = array<i64: 1, 128>}, {pipeline_mode = #tpu.pipeline_mode<synchronous>, transform_indices = @transform_2, window_bounds = array<i64: 1, 128>}, {transform_indices = @transform_3, window_bounds = array<i64: 1, 256, 128>}]} {
    %c0 = arith.constant 0 : index
    %c0_0 = arith.constant 0 : index
    %c0_1 = arith.constant 0 : index
    %0 = vector.load %arg1[%c0, %c0_0, %c0_1] : memref<1x256x128xbf16, #tpu.memory_space<vmem>>, vector<1x256x128xbf16>
    %1 = vector.shape_cast %0 : vector<1x256x128xbf16> to vector<256x128xbf16>
    %2 = arith.extf %1 : vector<256x128xbf16> to vector<256x128xf32>
    %c0_2 = arith.constant 0 : index
    %c0_3 = arith.constant 0 : index
    %3 = vector.load %arg2[%c0_2, %c0_3] : memref<1x128xf32, #tpu.memory_space<vmem>>, vector<1x128xf32>
    %4 = vector.broadcast %3 : vector<1x128xf32> to vector<256x128xf32>
    %5 = arith.mulf %2, %4 : vector<256x128xf32>
    %c0_4 = arith.constant 0 : index
    %c0_5 = arith.constant 0 : index
    %6 = vector.load %arg3[%c0_4, %c0_5] : memref<1x128xf32, #tpu.memory_space<vmem>>, vector<1x128xf32>
    %7 = vector.broadcast %6 : vector<1x128xf32> to vector<256x128xf32>
    %8 = arith.addf %5, %7 : vector<256x128xf32>
    %cst = arith.constant 0.000000e+00 : f32
    %9 = vector.broadcast %cst : f32 to vector<256x128xf32>
    %10 = arith.maximumf %8, %9 : vector<256x128xf32>
    %c0_6 = arith.constant 0 : index
    %c0_7 = arith.constant 0 : index
    %c0_8 = arith.constant 0 : index
    %11 = vector.load %arg4[%c0_6, %c0_7, %c0_8] : memref<1x256x128xf32, #tpu.memory_space<vmem>>, vector<1x256x128xf32>
    %12 = vector.shape_cast %11 : vector<1x256x128xf32> to vector<256x128xf32>
    %13 = vector.shape_cast %10 : vector<256x128xf32> to vector<1x256x128xf32>
    tpu.vector_store %arg4[%c0_6, %c0_7, %c0_8], %13 {strides = array<i32>} : memref<1x256x128xf32, #tpu.memory_space<vmem>>, vector<1x256x128xf32>,
    return
  }
  func.func @transform_0(%arg0: i32) -> (i32, i32, i32) {
    %c0_i32 = arith.constant 0 : i32
    %c0_i32_0 = arith.constant 0 : i32
    %c0_i32_1 = arith.constant 0 : i32
    return %arg0, %c0_i32, %c0_i32_0 : i32, i32, i32
  }
  func.func @transform_1(%arg0: i32) -> (i32, i32) {
    %c0_i32 = arith.constant 0 : i32
    %c0_i32_0 = arith.constant 0 : i32
    %c0_i32_1 = arith.constant 0 : i32
    return %c0_i32, %c0_i32_0 : i32, i32
  }
  func.func @transform_2(%arg0: i32) -> (i32, i32) {
    %c0_i32 = arith.constant 0 : i32
    %c0_i32_0 = arith.constant 0 : i32
    %c0_i32_1 = arith.constant 0 : i32
    return %c0_i32, %c0_i32_0 : i32, i32
  }
  func.func @transform_3(%arg0: i32) -> (i32, i32, i32) {
    %c0_i32 = arith.constant 0 : i32
    %c0_i32_0 = arith.constant 0 : i32
    %c0_i32_1 = arith.constant 0 : i32
    return %arg0, %c0_i32, %c0_i32_0 : i32, i32, i32
  }
}

</mosaic_0001>

<bundles_post_ra>
// kernel: cnbr_forward.3
= control target key start
LH: loop header
LB: loop body
LE: loop exit
PB: predicated region body
PF: predicated region fallthrough
CT: control target
= control target key end

     0   :  { %s562_s12 = smov 0   ;;  %s709_s0 = inlined_call_operand.vmem [shape: bf16[2,256,128], index: 0, kind: input, shape index: {}]   ;;  %s710_s1 = inlined_call_operand.vmem [shape: f32[1,128], index: 1, kind: input, shape index: {}]   ;;  %s711_s2 = inlined_call_operand.vmem [shape: f32[1,128], index: 2, kind: input, shape index: {}]   ;;  %s712_s3 = inlined_call_operand.vmem [shape: f32[2,256,128], index: 3, kind: output, shape index: {}]  }
   0x1 LB: > { %s432_s13 = sadd.s32 4294967295, %s540_s12   ;;  %p436_p0 = scmp.ge.s32.totalorder %s540_s12, 1  ;;  %s540_s12 = sphi %s562_s12, %s13_s12  }
   0x2   : > { %p137_p1 = scmp.lt.s32.totalorder %s540_s12, 3 }
   0x4   : > { %p138_p2 = pnand %p436_p0, %p137_p1 }
   0x5   : > { %p161_p3 = scmp.lt.s32.totalorder (!%p138_p2), %s432_s13, 1  ;;  %v581_v0 = vld [vmem:[%s710_s1] ss:$0 sm:$0xff] (!%p138_p2) }
   0x6   : > { %141 = sbr.rel (%p138_p2) target bundleno = 53 (0x35), region = 32  ;;  %v590_v9 = vld [vmem:[%s711_s2] ss:$0 sm:$0xff] (!%p138_p2) }
   0xd   : > { %s714_s13 = smov (!%p161_p3, %s432_s13), 1 }
   0xe   : > { %s445_s14 = sshll.u32 %s714_s13, 7  ;;  %s446_s22 = sshll.u32 %s714_s13, 8 }
   0xf   : > { %s576_s17 = scalar_lea.vmem %s709_s0, %s445_s14  ;;  %s608_s25 = scalar_lea.vmem %s712_s3, %s446_s22 }
  0x10   : > { %v448_v1 = vld [vmem:[%s576_s17] sm:$0xff]   ;;  %v511_v2 = vld [vmem:[%s576_s17 + $0x8] sm:$0xff]   ;;  %v512_v3 = vld [vmem:[%s576_s17 + $0x10] sm:$0xff]  }
  0x11   : > { %v449_v4 = vunpack.c.l.bf16 %v448_v1  ;;  %v450_v5 = vunpack.c.h.bf16 %v448_v1  ;;  %v453_v6 = vunpack.c.l.bf16 %v511_v2  ;;  %v454_v7 = vunpack.c.h.bf16 %v511_v2  ;;  %v513_v8 = vld [vmem:[%s576_s17 + $0x18] sm:$0xff]   ;;  %v514_v30 = vld [vmem:[%s576_s17 + $0x20] sm:$0xff]   ;;  %v515_v31 = vld [vmem:[%s576_s17 + $0x28] sm:$0xff]  }
  0x12   : > { %v457_v10 = vunpack.c.l.bf16 %v512_v3  ;;  %v458_v11 = vunpack.c.h.bf16 %v512_v3  ;;  %v461_v12 = vunpack.c.l.bf16 %v513_v8  ;;  %v462_v13 = vunpack.c.h.bf16 %v513_v8  ;;  %v516_v36 = vld [vmem:[%s576_s17 + $0x30] sm:$0xff]   ;;  %v517_v37 = vld [vmem:[%s576_s17 + $0x38] sm:$0xff]   ;;  %v518_v3 = vld [vmem:[%s576_s17 + $0x40] sm:$0xff]  }
  0x13   : > { %v242_v14 = vmul.f32 %v449_v4, %v581_v0  ;;  %v243_v15 = vmul.f32 %v450_v5, %v581_v0  ;;  %v244_v16 = vmul.f32 %v453_v6, %v581_v0  ;;  %v245_v17 = vmul.f32 %v454_v7, %v581_v0  ;;  %v519_v4 = vld [vmem:[%s576_s17 + $0x48] sm:$0xff]  }
  0x14   : > { %v246_v18 = vmul.f32 %v457_v10, %v581_v0  ;;  %v247_v19 = vmul.f32 %v458_v11, %v581_v0  ;;  %v248_v20 = vmul.f32 %v461_v12, %v581_v0  ;;  %v249_v21 = vmul.f32 %v462_v13, %v581_v0  ;;  %v520_v10 = vld [vmem:[%s576_s17 + $0x50] sm:$0xff]   ;;  %v521_v11 = vld [vmem:[%s576_s17 + $0x58] sm:$0xff]  }
  0x15   : > { %v281_v22 = vadd.f32 %v590_v9, %v242_v14  ;;  %v282_v23 = vadd.f32 %v590_v9, %v243_v15  ;;  %v283_v24 = vadd.f32 %v590_v9, %v244_v16  ;;  %v284_v25 = vadd.f32 %v590_v9, %v245_v17 }
  0x16   : > { %v285_v26 = vadd.f32 %v590_v9, %v246_v18  ;;  %v286_v27 = vadd.f32 %v590_v9, %v247_v19  ;;  %v287_v28 = vadd.f32 %v590_v9, %v248_v20  ;;  %v288_v29 = vadd.f32 %v590_v9, %v249_v21 }
  0x17   : > { %v313_v32 = vmax.f32 %v281_v22, 0.0  ;;  %v314_v33 = vmax.f32 %v282_v23, 0.0  ;;  %v315_v34 = vmax.f32 %v283_v24, 0.0  ;;  %v316_v35 = vmax.f32 %v284_v25, 0.0 }
  0x18   : > { %v317_v38 = vmax.f32 %v285_v26, 0.0  ;;  %v318_v39 = vmax.f32 %v286_v27, 0.0  ;;  %v319_v40 = vmax.f32 %v287_v28, 0.0  ;;  %v320_v41 = vmax.f32 %v288_v29, 0.0 }
  0x19   : > { %345 = vst [vmem:[%s608_s25] sm:$0xff] %v313_v32  ;;  %346 = vst [vmem:[%s608_s25 + $0x8] sm:$0xff] %v314_v33  ;;  %v465_v42 = vunpack.c.l.bf16 %v514_v30  ;;  %v466_v43 = vunpack.c.h.bf16 %v514_v30  ;;  %v469_v44 = vunpack.c.l.bf16 %v515_v31  ;;  %v470_v45 = vunpack.c.h.bf16 %v515_v31 }
  0x1a   : > { %347 = vst [vmem:[%s608_s25 + $0x10] sm:$0xff] %v315_v34  ;;  %348 = vst [vmem:[%s608_s25 + $0x18] sm:$0xff] %v316_v35  ;;  %v473_v46 = vunpack.c.l.bf16 %v516_v36  ;;  %v474_v47 = vunpack.c.h.bf16 %v516_v36  ;;  %v477_v48 = vunpack.c.l.bf16 %v517_v37  ;;  %v478_v49 = vunpack.c.h.bf16 %v517_v37 }
  0x1b   : > { %349 = vst [vmem:[%s608_s25 + $0x20] sm:$0xff] %v317_v38  ;;  %350 = vst [vmem:[%s608_s25 + $0x28] sm:$0xff] %v318_v39  ;;  %v250_v50 = vmul.f32 %v465_v42, %v581_v0  ;;  %v251_v51 = vmul.f32 %v466_v43, %v581_v0  ;;  %v252_v52 = vmul.f32 %v469_v44, %v581_v0  ;;  %v481_v16 = vunpack.c.l.bf16 %v518_v3 }
  0x1c   : > { %351 = vst [vmem:[%s608_s25 + $0x30] sm:$0xff] %v319_v40  ;;  %352 = vst [vmem:[%s608_s25 + $0x38] sm:$0xff] %v320_v41  ;;  %v253_v53 = vmul.f32 %v470_v45, %v581_v0  ;;  %v254_v54 = vmul.f32 %v473_v46, %v581_v0  ;;  %v255_v55 = vmul.f32 %v474_v47, %v581_v0  ;;  %v482_v17 = vunpack.c.h.bf16 %v518_v3  ;;  %v522_v40 = vld [vmem:[%s576_s17 + $0x60] sm:$0xff]   ;;  %v523_v41 = vld [vmem:[%s576_s17 + $0x68] sm:$0xff]  }
  0x1d   : > { %v256_v56 = vmul.f32 %v477_v48, %v581_v0  ;;  %v257_v57 = vmul.f32 %v478_v49, %v581_v0  ;;  %v289_v58 = vadd.f32 %v590_v9, %v250_v50  ;;  %v290_v59 = vadd.f32 %v590_v9, %v251_v51  ;;  %v524_v46 = vld [vmem:[%s576_s17 + $0x70] sm:$0xff]   ;;  %v525_v47 = vld [vmem:[%s576_s17 + $0x78] sm:$0xff]  }
  0x1e   : > { %v291_v60 = vadd.f32 %v590_v9, %v252_v52  ;;  %v292_v61 = vadd.f32 %v590_v9, %v253_v53  ;;  %v293_v62 = vadd.f32 %v590_v9, %v254_v54  ;;  %v294_v63 = vadd.f32 %v590_v9, %v255_v55 }
  0x1f   : > { %v295_v1 = vadd.f32 %v590_v9, %v256_v56  ;;  %v296_v2 = vadd.f32 %v590_v9, %v257_v57  ;;  %v321_v5 = vmax.f32 %v289_v58, 0.0  ;;  %v322_v6 = vmax.f32 %v290_v59, 0.0 }
  0x20   : > { %v323_v7 = vmax.f32 %v291_v60, 0.0  ;;  %v324_v8 = vmax.f32 %v292_v61, 0.0  ;;  %v325_v12 = vmax.f32 %v293_v62, 0.0  ;;  %v326_v13 = vmax.f32 %v294_v63, 0.0 }
  0x21   : > { %v327_v14 = vmax.f32 %v295_v1, 0.0  ;;  %v328_v15 = vmax.f32 %v296_v2, 0.0  ;;  %353 = vst [vmem:[%s608_s25 + $0x40] sm:$0xff] %v321_v5  ;;  %354 = vst [vmem:[%s608_s25 + $0x48] sm:$0xff] %v322_v6  ;;  %v485_v18 = vunpack.c.l.bf16 %v519_v4  ;;  %v486_v19 = vunpack.c.h.bf16 %v519_v4 }
  0x22   : > { %355 = vst [vmem:[%s608_s25 + $0x50] sm:$0xff] %v323_v7  ;;  %356 = vst [vmem:[%s608_s25 + $0x58] sm:$0xff] %v324_v8  ;;  %v489_v20 = vunpack.c.l.bf16 %v520_v10  ;;  %v490_v21 = vunpack.c.h.bf16 %v520_v10  ;;  %v493_v22 = vunpack.c.l.bf16 %v521_v11  ;;  %v494_v23 = vunpack.c.h.bf16 %v521_v11 }
  0x23   : > { %357 = vst [vmem:[%s608_s25 + $0x60] sm:$0xff] %v325_v12  ;;  %358 = vst [vmem:[%s608_s25 + $0x68] sm:$0xff] %v326_v13  ;;  %v258_v24 = vmul.f32 %v481_v16, %v581_v0  ;;  %v259_v25 = vmul.f32 %v482_v17, %v581_v0  ;;  %v260_v26 = vmul.f32 %v485_v18, %v581_v0  ;;  %v497_v52 = vunpack.c.l.bf16 %v522_v40 }
  0x24   : > { %359 = vst [vmem:[%s608_s25 + $0x70] sm:$0xff] %v327_v14  ;;  %360 = vst [vmem:[%s608_s25 + $0x78] sm:$0xff] %v328_v15  ;;  %v261_v27 = vmul.f32 %v486_v19, %v581_v0  ;;  %v262_v28 = vmul.f32 %v489_v20, %v581_v0  ;;  %v263_v29 = vmul.f32 %v490_v21, %v581_v0  ;;  %v498_v53 = vunpack.c.h.bf16 %v522_v40 }
  0x25   : > { %v264_v30 = vmul.f32 %v493_v22, %v581_v0  ;;  %v265_v31 = vmul.f32 %v494_v23, %v581_v0  ;;  %v297_v32 = vadd.f32 %v590_v9, %v258_v24  ;;  %v298_v33 = vadd.f32 %v590_v9, %v259_v25 }
  0x26   : > { %v299_v34 = vadd.f32 %v590_v9, %v260_v26  ;;  %v300_v35 = vadd.f32 %v590_v9, %v261_v27  ;;  %v301_v36 = vadd.f32 %v590_v9, %v262_v28  ;;  %v302_v37 = vadd.f32 %v590_v9, %v263_v29 }
  0x27   : > { %v303_v38 = vadd.f32 %v590_v9, %v264_v30  ;;  %v304_v39 = vadd.f32 %v590_v9, %v265_v31  ;;  %v329_v42 = vmax.f32 %v297_v32, 0.0  ;;  %v330_v43 = vmax.f32 %v298_v33, 0.0 }
  0x28   : > { %v331_v44 = vmax.f32 %v299_v34, 0.0  ;;  %v332_v45 = vmax.f32 %v300_v35, 0.0  ;;  %v333_v48 = vmax.f32 %v301_v36, 0.0  ;;  %v334_v49 = vmax.f32 %v302_v37, 0.0 }
  0x29   : > { %v335_v50 = vmax.f32 %v303_v38, 0.0  ;;  %v336_v51 = vmax.f32 %v304_v39, 0.0  ;;  %361 = vst [vmem:[%s608_s25 + $0x80] sm:$0xff] %v329_v42  ;;  %362 = vst [vmem:[%s608_s25 + $0x88] sm:$0xff] %v330_v43  ;;  %v501_v54 = vunpack.c.l.bf16 %v523_v41  ;;  %v502_v55 = vunpack.c.h.bf16 %v523_v41 }
  0x2a   : > { %363 = vst [vmem:[%s608_s25 + $0x90] sm:$0xff] %v331_v44  ;;  %364 = vst [vmem:[%s608_s25 + $0x98] sm:$0xff] %v332_v45  ;;  %v505_v56 = vunpack.c.l.bf16 %v524_v46  ;;  %v506_v57 = vunpack.c.h.bf16 %v524_v46  ;;  %v509_v58 = vunpack.c.l.bf16 %v525_v47  ;;  %v510_v59 = vunpack.c.h.bf16 %v525_v47 }
  0x2b   : > { %365 = vst [vmem:[%s608_s25 + $0xa0] sm:$0xff] %v333_v48  ;;  %366 = vst [vmem:[%s608_s25 + $0xa8] sm:$0xff] %v334_v49  ;;  %v266_v60 = vmul.f32 %v497_v52, %v581_v0  ;;  %v267_v61 = vmul.f32 %v498_v53, %v581_v0  ;;  %v268_v62 = vmul.f32 %v501_v54, %v581_v0 }
  0x2c   : > { %367 = vst [vmem:[%s608_s25 + $0xb0] sm:$0xff] %v335_v50  ;;  %368 = vst [vmem:[%s608_s25 + $0xb8] sm:$0xff] %v336_v51  ;;  %v269_v63 = vmul.f32 %v502_v55, %v581_v0  ;;  %v270_v1 = vmul.f32 %v505_v56, %v581_v0  ;;  %v271_v2 = vmul.f32 %v506_v57, %v581_v0 }
  0x2d   : > { %v272_v3 = vmul.f32 %v509_v58, %v581_v0  ;;  %v273_v4 = vmul.f32 %v510_v59, %v581_v0  ;;  %v305_v5 = vadd.f32 %v590_v9, %v266_v60  ;;  %v306_v6 = vadd.f32 %v590_v9, %v267_v61 }
  0x2e   : > { %v307_v7 = vadd.f32 %v590_v9, %v268_v62  ;;  %v308_v8 = vadd.f32 %v590_v9, %v269_v63  ;;  %v309_v10 = vadd.f32 %v590_v9, %v270_v1  ;;  %v310_v11 = vadd.f32 %v590_v9, %v271_v2 }
  0x2f   : > { %v311_v0 = vadd.f32 %v590_v9, %v272_v3  ;;  %v312_v12 = vadd.f32 %v590_v9, %v273_v4  ;;  %v337_v13 = vmax.f32 %v305_v5, 0.0  ;;  %v338_v14 = vmax.f32 %v306_v6, 0.0 }
  0x30   : > { %v339_v15 = vmax.f32 %v307_v7, 0.0  ;;  %v340_v16 = vmax.f32 %v308_v8, 0.0  ;;  %v341_v17 = vmax.f32 %v309_v10, 0.0  ;;  %v342_v18 = vmax.f32 %v310_v11, 0.0 }
  0x31   : > { %v343_v19 = vmax.f32 %v311_v0, 0.0  ;;  %v344_v20 = vmax.f32 %v312_v12, 0.0  ;;  %369 = vst [vmem:[%s608_s25 + $0xc0] sm:$0xff] %v337_v13  ;;  %370 = vst [vmem:[%s608_s25 + $0xc8] sm:$0xff] %v338_v14 }
  0x32   : > { %371 = vst [vmem:[%s608_s25 + $0xd0] sm:$0xff] %v339_v15  ;;  %372 = vst [vmem:[%s608_s25 + $0xd8] sm:$0xff] %v340_v16 }
  0x33   : > { %373 = vst [vmem:[%s608_s25 + $0xe0] sm:$0xff] %v341_v17  ;;  %374 = vst [vmem:[%s608_s25 + $0xe8] sm:$0xff] %v342_v18 }
  0x34   : > { %375 = vst [vmem:[%s608_s25 + $0xf0] sm:$0xff] %v343_v19  ;;  %376 = vst [vmem:[%s608_s25 + $0xf8] sm:$0xff] %v344_v20 }
  0x35 PF: > { %s13_s12 = sadd.s32 1, %s540_s12  }
  0x36   : > { %p10_p4 = scmp.ge.s32.totalorder %s13_s12, 4  }
  0x38   :  { %12 = sbr.rel (!%p10_p4) target bundleno = 1 (0x1), region = 62 }

// kernel: cnbr_forward.2
= control target key start
LH: loop header
LB: loop body
LE: loop exit
PB: predicated region body
PF: predicated region fallthrough
CT: control target
= control target key end

     0   :  { %s2289_s18 = smov 0   ;;  %s2856_s0 = inlined_call_operand.vmem [shape: bf16[2,18,18,4], index: 0, kind: input, shape index: {}]   ;;  %s2857_s1 = inlined_call_operand.vmem [shape: bf16[36,128], index: 1, kind: input, shape index: {}]   ;;  %s2858_s2 = inlined_call_operand.vmem [shape: f32[1,128], index: 2, kind: input, shape index: {}]   ;;  %s2859_s3 = inlined_call_operand.vmem [shape: bf16[2,256,128], index: 3, kind: output, shape index: {0}]   ;;  %s2860_s4 = inlined_call_operand.vmem [shape: f32[2,1,128], index: 4, kind: output, shape index: {1}]   ;;  %s2861_s5 = inlined_call_operand.vmem [shape: f32[2,1,128], index: 5, kind: output, shape index: {2}]  }
   0x1 LB: > { %s1896_s19 = sadd.s32 4294967295, %s2249_s18   ;;  %p1900_p0 = scmp.ge.s32.totalorder %s2249_s18, 1  ;;  %s2249_s18 = sphi %s2289_s18, %s16_s18  }
   0x2   : > { %p192_p1 = scmp.lt.s32.totalorder %s2249_s18, 3 }
   0x4   : > { %p193_p2 = pnand %p1900_p0, %p192_p1 }
   0x5   : > { %p226_p3 = scmp.lt.s32.totalorder (!%p193_p2), %s1896_s19, 1  ;;  %vm716_vm0 = vcmask (!%p193_p2), 1046528   ;;  %vm458_vm1 = vsmask.f32 (!%p193_p2), 7424  ;;  %vm393_vm2 = vcmask (!%p193_p2), 31744   ;;  %s2251_s24 = smov (!%p193_p2), 12  }
   0x6   : > { %196 = sbr.rel (%p193_p2) target bundleno = 633 (0x279), region = 32  ;;  %s2252_s25 = smov (!%p193_p2), 20   ;;  %v2226_v51 = vld [vmem:[%s2857_s1] sm:$0xff] (!%p193_p2)   ;;  %v2227_v53 = vld [vmem:[%s2857_s1 + $0x8] sm:$0xff] (!%p193_p2)   ;;  %vm1358_vm3 = vcmask (!%p193_p2), 1041408   ;;  %vm699_vm4 = vcmask (!%p193_p2), 64544  }
   0x7   : > { %s2253_s26 = smov (!%p193_p2), 8   ;;  %s2254_s27 = smov (!%p193_p2), 4   ;;  %2141 = vmatprep.subr.bf16.mxu0 (!%p193_p2), %v2226_v51  ;;  %2179 = vmatprep.subr.bf16.mxu1 (!%p193_p2), %v2226_v51  ;;  %v2229_v59 = vld [vmem:[%s2857_s1 + $0x10] ss:$0 sps:$4 sm:$0x33] (!%p193_p2)   ;;  %vm813_vm5 = vcmask (!%p193_p2), 97344  }
   0x8   : > { %s2255_s28 = smov (!%p193_p2), 16   ;;  %s2256_s29 = smov (!%p193_p2), 24   ;;  %2142 = vmatpush3.bf16.msra.mxu0 (!%p193_p2), %v2226_v51  ;;  %2182 = vmatpush3.bf16.msra.mxu1 (!%p193_p2), %v2226_v51  ;;  %v1360_v61 = vsel (!%p193_p2), %vm1358_vm3, %v2229_v59, 0  ;;  %vm883_vm6 = vcmask (!%p193_p2), 130144   ;;  %vm963_vm7 = vcmask (!%p193_p2), 162944   ;;  %vm1031_vm8 = vcmask (!%p193_p2), 195744  }
   0x9   : > { %s2257_s9 = smov (!%p193_p2), 28   ;;  %2143 = vmatprep.subr.bf16.mxu0 (!%p193_p2), %v2227_v53  ;;  %2180 = vmatprep.subr.bf16.mxu1 (!%p193_p2), %v2227_v53  ;;  %s2258_s10 = smov (!%p193_p2), 32   ;;  %vm1101_vm9 = vcmask (!%p193_p2), 228544   ;;  %vm1181_vm10 = vcmask (!%p193_p2), 261344   ;;  %vm1249_vm11 = vcmask (!%p193_p2), 294144   ;;  %vm1309_vm12 = vcmask (!%p193_p2), 293888  }
   0xc   : > { %2144 = vmatpush3.bf16.msra.mxu0 (!%p193_p2), %v2227_v53  ;;  %2183 = vmatpush3.bf16.msra.mxu1 (!%p193_p2), %v2227_v53 }
   0xd   : > { %s2863_s19 = smov (!%p226_p3, %s1896_s19), 1  ;;  %2185 = vmatprep.subr.msk.bf16.mxu0 %vm1358_vm3, %v2229_v59  ;;  %2186 = vmatprep.subr.msk.bf16.mxu1 %vm1358_vm3, %v2229_v59 }
   0xe   : > { %s2187_s20 = smul.u32 216, %s2863_s19  ;;  %s1994_s15 = sshll.u32 %s2863_s19, 7 }
  0x10   : > { %s2303_s23 = scalar_lea.vmem %s2856_s0, %s2187_s20  ;;  %2146 = vmatpush3.bf16.msra.mxu0 %v1360_v61  ;;  %2184 = vmatpush3.bf16.msra.mxu1 %v1360_v61  ;;  %s2796_s20 = scalar_lea.vmem %s2859_s3, %s1994_s15 }
  0x11   : > { %v2306_v0 = vld [vmem:[%s2303_s23 + $0x18] sm:$0xff]   ;;  %v2205_v1 = vld [vmem:[%s2303_s23 + $0xc] sm:$0xff]   ;;  %v2206_v2 = vld [vmem:[%s2303_s23 + $0x14] ss:$0 sps:$4 sm:$0x11]  }
  0x12   : > { %837 = vrot.lane.b32.xlu1 %v2306_v0, %s2251_s24  ;;  %v2207_v3 = vld [vmem:[%s2303_s23] sm:$0xff]   ;;  %396 = vst.msk [vmem:[#allocation2 + $0x10] sm:$0xff] %vm393_vm2, %v2306_v0  ;;  %835 = vrot.lane.b32.xlu0 %v2205_v1, %s2251_s24  ;;  %v720_v4 = vrot.slane %v2205_v1, 1  ;;  %395 = vst.msk [vmem:[#allocation2 + $0x8] sm:$0xff] %vm393_vm2, %v2205_v1  ;;  %v721_v5 = vrot.slane %v2206_v2, 1  ;;  %v472_v10 = vshrl.u32 %v2205_v1, 16 }
  0x13   : > { %v2208_v6 = vld [vmem:[%s2303_s23 + $0x8] ss:$0 sps:$4 sm:$0x11]   ;;  %394 = vst.msk [vmem:[#allocation2] sm:$0xff] %vm393_vm2, %v2207_v3  ;;  %v717_v7 = vrot.slane %v2207_v3, 1  ;;  %v460_v8 = vshrl.u32 %v2207_v3, 16 }
  0x14   : > { %v462_v9 = vshll.u32 %v2207_v3, 16  ;;  %v722_v11 = vsel %vm716_vm0, %v720_v4, %v721_v5  ;;  %v718_v12 = vrot.slane %v2208_v6, 1  ;;  %v467_v13 = vshll.u32 %v2208_v6, 16  ;;  %v2209_v14 = vld [vmem:[%s2303_s23 + $0x20] ss:$0 sps:$4 sm:$0x11]  }
  0x15   : > { %v474_v15 = vshll.u32 %v2205_v1, 16  ;;  %v479_v17 = vshll.u32 %v2206_v2, 16  ;;  %v486_v18 = vshll.u32 %v2306_v0, 16  ;;  %v2325_v22 = vld [vmem:[%s2303_s23 + $0x24] sm:$0xff]   ;;  %v723_v24 = vrot.slane %v2306_v0, 1  ;;  %v2331_v27 = vld [vmem:[%s2303_s23 + $0x30] sm:$0xff]  }
  0x16   : > { %983 = vrot.lane.b32.xlu0 %v722_v11, %s2252_s25  ;;  %v464_v16 = vrot.slane %v462_v9, 1  ;;  %v719_v19 = vsel %vm716_vm0, %v717_v7, %v718_v12  ;;  %v469_v20 = vrot.slane %v467_v13, 1  ;;  %v484_v26 = vshrl.u32 %v2306_v0, 16  ;;  %v2334_v32 = vld [vmem:[%s2303_s23 + $0x3c] sm:$0xff]   ;;  %397 = vst.msk [vmem:[#allocation2 + $0x18] sm:$0xff] %vm393_vm2, %v2325_v22  ;;  %398 = vst.msk [vmem:[#allocation2 + $0x20] sm:$0xff] %vm393_vm2, %v2331_v27 }
  0x17   : > { %v476_v21 = vrot.slane %v474_v15, 1  ;;  %765 = vrot.lane.b32.xlu1 %v719_v19, %s2253_s26  ;;  %v481_v25 = vrot.slane %v479_v17, 1  ;;  %v724_v28 = vrot.slane %v2209_v14, 1  ;;  %v488_v30 = vrot.slane %v486_v18, 1  ;;  %v2343_v34 = vld [vmem:[%s2303_s23 + $0x48] sm:$0xff]   ;;  %399 = vst.msk [vmem:[#allocation2 + $0x28] sm:$0xff] %vm393_vm2, %v2334_v32 }
  0x18   : > { %v465_v23 = vor.u32 %v464_v16, %v460_v8  ;;  %v491_v31 = vshll.u32 %v2209_v14, 16  ;;  %v2211_v36 = vld [vmem:[%s2303_s23 + $0x2c] ss:$0 sps:$4 sm:$0x11]   ;;  %v498_v40 = vshll.u32 %v2325_v22, 16  ;;  %400 = vst.msk [vmem:[#allocation2 + $0x30] sm:$0xff] %vm393_vm2, %v2343_v34 }
  0x19   : > { %v477_v29 = vor.u32 %v476_v21, %v472_v10  ;;  %v725_v37 = vsel %vm716_vm0, %v723_v24, %v724_v28  ;;  %v489_v38 = vor.u32 %v488_v30, %v484_v26  ;;  %v496_v42 = vshrl.u32 %v2325_v22, 16  ;;  %v2360_v45 = vld [vmem:[%s2303_s23 + $0x54] sm:$0xff]   ;;  %v2364_v48 = vld [vmem:[%s2303_s23 + $0x60] sm:$0xff]   ;;  %v2367_v49 = vld [vmem:[%s2303_s23 + $0x6c] sm:$0xff]  }
  0x1a   : > { %v470_v33 = vsel %vm458_vm1, %v465_v23, %v469_v20  ;;  %v493_v39 = vrot.slane %v491_v31, 1  ;;  %v500_v43 = vrot.slane %v498_v40, 1  ;;  %v503_v44 = vshll.u32 %v2211_v36, 16  ;;  %401 = vst.msk [vmem:[#allocation2 + $0x38] sm:$0xff] %vm393_vm2, %v2360_v45  ;;  %v2372_v50 = vld [vmem:[%s2303_s23 + $0x78] sm:$0xff]   ;;  %402 = vst.msk [vmem:[#allocation2 + $0x40] sm:$0xff] %vm393_vm2, %v2364_v48 }
  0x1b   : > { %651 = vrot.lane.b32.xlu0 %v470_v33, %s2254_s27  ;;  %767 = vrot.lane.b32.xlu1 %v722_v11, %s2253_s26  ;;  %v482_v35 = vsel %vm458_vm1, %v477_v29, %v481_v25  ;;  %403 = vst.msk [vmem:[#allocation2 + $0x48] sm:$0xff] %vm393_vm2, %v2367_v49  ;;  %404 = vst.msk [vmem:[#allocation2 + $0x50] sm:$0xff] %vm393_vm2, %v2372_v50  ;;  %v726_v54 = vrot.slane %v2325_v22, 1  ;;  %v727_v55 = vrot.slane %v2211_v36, 1  ;;  %v2395_v56 = vld [vmem:[%s2303_s23 + $0x84] sm:$0xff]   ;;  %v510_v60 = vshll.u32 %v2331_v27, 16 }
  0x1c   : > { %v494_v41 = vsel %vm458_vm1, %v489_v38, %v493_v39  ;;  %v501_v46 = vor.u32 %v500_v43, %v496_v42  ;;  %v505_v47 = vrot.slane %v503_v44, 1  ;;  %405 = vst.msk [vmem:[#allocation2 + $0x58] sm:$0xff] %vm393_vm2, %v2395_v56  ;;  %v2213_v58 = vld [vmem:[%s2303_s23 + $0x38] ss:$0 sps:$4 sm:$0x11]   ;;  %v508_v63 = vshrl.u32 %v2331_v27, 16 }
  0x1d   : > { %v728_v57 = vsel %vm716_vm0, %v726_v54, %v727_v55  ;;  %v515_v62 = vshll.u32 %v2213_v58, 16  ;;  %v2413_v2 = vld [vmem:[%s2303_s23 + $0x90] sm:$0xff]   ;;  %v729_v5 = vrot.slane %v2331_v27, 1  ;;  %v730_v6 = vrot.slane %v2213_v58, 1  ;;  %v2432_v13 = vld [vmem:[%s2303_s23 + $0x9c] sm:$0xff]   ;;  %v2455_v25 = vld [vmem:[%s2303_s23 + $0xa8] sm:$0xff]  }
  0x1e   : > { %v506_v52 = vsel %vm458_vm1, %v501_v46, %v505_v47  ;;  %406 = vst.msk [vmem:[#allocation2 + $0x60] sm:$0xff] %vm393_vm2, %v2413_v2  ;;  %v2215_v7 = vld [vmem:[%s2303_s23 + $0x44] ss:$0 sps:$4 sm:$0x11]   ;;  %v522_v8 = vshll.u32 %v2334_v32, 16  ;;  %v520_v10 = vshrl.u32 %v2334_v32, 16 }
  0x1f   : > { %653 = vrot.lane.b32.xlu0 %v482_v35, %s2254_s27  ;;  %985 = vrot.lane.b32.xlu1 %v725_v37, %s2252_s25  ;;  %v517_v1 = vrot.slane %v515_v62, 1  ;;  %v731_v9 = vsel %vm716_vm0, %v729_v5, %v730_v6  ;;  %v527_v12 = vshll.u32 %v2215_v7, 16  ;;  %407 = vst.msk [vmem:[#allocation2 + $0x68] sm:$0xff] %vm393_vm2, %v2432_v13  ;;  %v732_v17 = vrot.slane %v2334_v32, 1  ;;  %408 = vst.msk [vmem:[#allocation2 + $0x70] sm:$0xff] %vm393_vm2, %v2455_v25  ;;  %v2474_v38 = vld [vmem:[%s2303_s23 + $0xb4] sm:$0xff]  }
  0x20   : > { %v524_v11 = vrot.slane %v522_v8, 1  ;;  %v733_v18 = vrot.slane %v2215_v7, 1  ;;  %v2217_v20 = vld [vmem:[%s2303_s23 + $0x50] ss:$0 sps:$4 sm:$0x11]   ;;  %v534_v21 = vshll.u32 %v2343_v34, 16 }
  0x21   : > { %v529_v15 = vrot.slane %v527_v12, 1  ;;  %v539_v24 = vshll.u32 %v2217_v20, 16  ;;  %v735_v29 = vrot.slane %v2343_v34, 1  ;;  %v736_v30 = vrot.slane %v2217_v20, 1  ;;  %409 = vst.msk [vmem:[#allocation2 + $0x78] sm:$0xff] %vm393_vm2, %v2474_v38 }
  0x22   : > { %v525_v14 = vor.u32 %v524_v11, %v520_v10  ;;  %v734_v19 = vsel %vm716_vm0, %v732_v17, %v733_v18  ;;  %v536_v23 = vrot.slane %v534_v21, 1  ;;  %v2219_v31 = vld [vmem:[%s2303_s23 + $0x5c] ss:$0 sps:$4 sm:$0x11]   ;;  %v546_v33 = vshll.u32 %v2360_v45, 16 }
  0x23   : > { %915 = vrot.lane.b32.xlu0 %v482_v35, %s2255_s28  ;;  %917 = vrot.lane.b32.xlu1 %v494_v41, %s2255_s28  ;;  %v737_v35 = vsel %vm716_vm0, %v735_v29, %v736_v30  ;;  %v544_v36 = vshrl.u32 %v2360_v45, 16  ;;  %v738_v42 = vrot.slane %v2360_v45, 1  ;;  %v739_v43 = vrot.slane %v2219_v31, 1  ;;  %v2221_v46 = vld [vmem:[%s2303_s23 + $0x68] ss:$0 sps:$4 sm:$0x11]  }
  0x24   : > { %v530_v16 = vsel %vm458_vm1, %v525_v14, %v529_v15  ;;  %v556_v47 = vshrl.u32 %v2364_v48, 16  ;;  %v742_v58 = vrot.slane %v2221_v46, 1  ;;  %v2223_v59 = vld [vmem:[%s2303_s23 + $0x74] ss:$0 sps:$4 sm:$0x11]   ;;  %v568_v62 = vshrl.u32 %v2367_v49, 16 }
  0x25   : > { %v740_v44 = vsel %vm716_vm0, %v738_v42, %v739_v43  ;;  %v744_v8 = vrot.slane %v2367_v49, 1  ;;  %v2225_v14 = vld [vmem:[%s2303_s23 + $0x80] ss:$0 sps:$4 sm:$0x11]   ;;  %v582_v15 = vshll.u32 %v2372_v50, 16  ;;  %v580_v18 = vshrl.u32 %v2372_v50, 16 }
  0x26   : > { %v587_v20 = vshll.u32 %v2225_v14, 16  ;;  %v747_v29 = vrot.slane %v2372_v50, 1  ;;  %v748_v30 = vrot.slane %v2225_v14, 1 }
  0x27   : > { %1053 = vrot.lane.b32.xlu0 %v2306_v0, %s2256_s29  ;;  %1055 = vrot.lane.b32.xlu1 %v2325_v22, %s2256_s29  ;;  %v512_v0 = vrot.slane %v510_v60, 1  ;;  %v570_v60 = vshll.u32 %v2367_v49, 16 }
  0x29   : > { %v513_v3 = vor.u32 %v512_v0, %v508_v63  ;;  %v575_v63 = vshll.u32 %v2223_v59, 16 }
  0x2b   : > { %1133 = vrot.lane.b32.xlu0 %v494_v41, %s2257_s9  ;;  %1135 = vrot.lane.b32.xlu1 %v506_v52, %s2257_s9  ;;  %v518_v4 = vsel %vm458_vm1, %v513_v3, %v517_v1 }
  0x2f   : > { %1201 = vrot.lane.b32.xlu0 %v725_v37, %s2258_s10  ;;  %655 = vrot.lane.b32.xlu1 %v494_v41, %s2254_s27 }
  0x33   : > { %1203 = vrot.lane.b32.xlu0 %v728_v57, %s2258_s10  ;;  %657 = vrot.lane.b32.xlu1 %v506_v52, %s2254_s27 }
  0x37   : > { %769 = vrot.lane.b32.xlu0 %v725_v37, %s2253_s26  ;;  %771 = vrot.lane.b32.xlu1 %v728_v57, %s2253_s26  ;;  %v551_v37 = vshll.u32 %v2219_v31, 16  ;;  %v2230_v31 = vld [vmem:[%s2303_s23 + $0x8c] ss:$0 sps:$4 sm:$0x11]  }
  0x39   : > { %v553_v40 = vrot.slane %v551_v37, 1 }
  0x3b   : > { %839 = vrot.lane.b32.xlu0 %v2325_v22, %s2251_s24  ;;  %841 = vrot.lane.b32.xlu1 %v2331_v27, %s2251_s24  ;;  %v532_v22 = vshrl.u32 %v2343_v34, 16 }
  0x3d   : > { %v537_v26 = vor.u32 %v536_v23, %v532_v22 }
  0x3f   : > { %919 = vrot.lane.b32.xlu0 %v506_v52, %s2255_s28  ;;  %921 = vrot.lane.b32.xlu1 %v518_v4, %s2255_s28  ;;  %v563_v52 = vshll.u32 %v2221_v46, 16 }
  0x41   : > { %v565_v54 = vrot.slane %v563_v52, 1  ;;  %v751_v52 = vrot.slane %v2230_v31, 1 }
  0x43   : > { %987 = vrot.lane.b32.xlu0 %v728_v57, %s2252_s25  ;;  %989 = vrot.lane.b32.xlu1 %v731_v9, %s2252_s25  ;;  %v741_v57 = vrot.slane %v2364_v48, 1 }
  0x45   : > { %v743_v61 = vsel %vm716_vm0, %v741_v57, %v742_v58 }
  0x47   : > { %1057 = vrot.lane.b32.xlu0 %v2331_v27, %s2256_s29  ;;  %1059 = vrot.lane.b32.xlu1 %v2334_v32, %s2256_s29  ;;  %v541_v27 = vrot.slane %v539_v24, 1  ;;  %v589_v24 = vrot.slane %v587_v20, 1 }
  0x49   : > { %v542_v28 = vsel %vm458_vm1, %v537_v26, %v541_v27 }
  0x4b   : > { %1137 = vrot.lane.b32.xlu0 %v518_v4, %s2257_s9  ;;  %1139 = vrot.lane.b32.xlu1 %v530_v16, %s2257_s9 }
  0x4f   : > { %1205 = vrot.lane.b32.xlu0 %v731_v9, %s2258_s10  ;;  %659 = vrot.lane.b32.xlu1 %v518_v4, %s2254_s27  ;;  %v577_v4 = vrot.slane %v575_v63, 1 }
  0x53   : > { %1207 = vrot.lane.b32.xlu0 %v734_v19, %s2258_s10  ;;  %661 = vrot.lane.b32.xlu1 %v530_v16, %s2254_s27 }
  0x57   : > { %773 = vrot.lane.b32.xlu0 %v731_v9, %s2253_s26  ;;  %775 = vrot.lane.b32.xlu1 %v734_v19, %s2253_s26  ;;  %v745_v9 = vrot.slane %v2223_v59, 1  ;;  %v2232_v59 = vld [vmem:[%s2303_s23 + $0x98] ss:$0 sps:$4 sm:$0x11]  }
  0x59   : > { %v746_v11 = vsel %vm716_vm0, %v744_v8, %v745_v9  ;;  %v753_v9 = vrot.slane %v2413_v2, 1 }
  0x5b   : > { %843 = vrot.lane.b32.xlu0 %v2334_v32, %s2251_s24  ;;  %845 = vrot.lane.b32.xlu1 %v2343_v34, %s2251_s24  ;;  %v548_v32 = vrot.slane %v546_v33, 1  ;;  %v594_v33 = vshll.u32 %v2395_v56, 16 }
  0x5d   : > { %v549_v39 = vor.u32 %v548_v32, %v544_v36  ;;  %v749_v36 = vsel %vm716_vm0, %v747_v29, %v748_v30  ;;  %v592_v32 = vshrl.u32 %v2395_v56, 16  ;;  %v596_v37 = vrot.slane %v594_v33, 1 }
  0x5f   : > { %923 = vrot.lane.b32.xlu0 %v530_v16, %s2255_s28  ;;  %925 = vrot.lane.b32.xlu1 %v542_v28, %s2255_s28  ;;  %v554_v41 = vsel %vm458_vm1, %v549_v39, %v553_v40  ;;  %v599_v39 = vshll.u32 %v2230_v31, 16  ;;  %v597_v42 = vor.u32 %v596_v37, %v592_v32 }
  0x61   : > { %v601_v43 = vrot.slane %v599_v39, 1  ;;  %v628_v39 = vshrl.u32 %v2455_v25, 16 }
  0x63   : > { %991 = vrot.lane.b32.xlu0 %v734_v19, %s2252_s25  ;;  %993 = vrot.lane.b32.xlu1 %v737_v35, %s2252_s25  ;;  %v584_v19 = vrot.slane %v582_v15, 1  ;;  %v616_v15 = vshrl.u32 %v2432_v13, 16 }
  0x65   : > { %v585_v23 = vor.u32 %v584_v19, %v580_v18 }
  0x67   : > { %1061 = vrot.lane.b32.xlu0 %v2343_v34, %s2256_s29  ;;  %1063 = vrot.lane.b32.xlu1 %v2360_v45, %s2256_s29  ;;  %v558_v34 = vshll.u32 %v2364_v48, 16 }
  0x69   : > { %v560_v51 = vrot.slane %v558_v34, 1 }
  0x6b   : > { %1141 = vrot.lane.b32.xlu0 %v542_v28, %s2257_s9  ;;  %1143 = vrot.lane.b32.xlu1 %v554_v41, %s2257_s9  ;;  %v561_v53 = vor.u32 %v560_v51, %v556_v47  ;;  %v602_v47 = vsel %vm458_vm1, %v597_v42, %v601_v43 }
  0x6d   : > { %v566_v55 = vsel %vm458_vm1, %v561_v53, %v565_v54 }
  0x6f   : > { %1209 = vrot.lane.b32.xlu0 %v737_v35, %s2258_s10  ;;  %663 = vrot.lane.b32.xlu1 %v542_v28, %s2254_s27  ;;  %v590_v28 = vsel %vm458_vm1, %v585_v23, %v589_v24 }
  0x73   : > { %1211 = vrot.lane.b32.xlu0 %v740_v44, %s2258_s10  ;;  %665 = vrot.lane.b32.xlu1 %v554_v41, %s2254_s27 }
  0x77   : > { %777 = vrot.lane.b32.xlu0 %v737_v35, %s2253_s26  ;;  %779 = vrot.lane.b32.xlu1 %v740_v44, %s2253_s26 }
  0x7b   : > { %847 = vrot.lane.b32.xlu0 %v2360_v45, %s2251_s24  ;;  %849 = vrot.lane.b32.xlu1 %v2364_v48, %s2251_s24  ;;  %v572_v45 = vrot.slane %v570_v60, 1  ;;  %v606_v60 = vshll.u32 %v2413_v2, 16 }
  0x7d   : > { %v573_v3 = vor.u32 %v572_v45, %v568_v62  ;;  %v604_v45 = vshrl.u32 %v2413_v2, 16  ;;  %v608_v63 = vrot.slane %v606_v60, 1 }
  0x7f   : > { %927 = vrot.lane.b32.xlu0 %v554_v41, %s2255_s28  ;;  %929 = vrot.lane.b32.xlu1 %v566_v55, %s2255_s28  ;;  %v578_v6 = vsel %vm458_vm1, %v573_v3, %v577_v4  ;;  %v609_v4 = vor.u32 %v608_v63, %v604_v45 }
  0x83   : > { %995 = vrot.lane.b32.xlu0 %v740_v44, %s2252_s25  ;;  %997 = vrot.lane.b32.xlu1 %v743_v61, %s2252_s25 }
  0x84   : > { %v838_v0 = vpop.permute.xlu1 %837  ;;  %v836_v1 = vpop.permute.xlu0 %835 }
  0x87   : > { %1065 = vrot.lane.b32.xlu0 %v2364_v48, %s2256_s29  ;;  %1067 = vrot.lane.b32.xlu1 %v2367_v49, %s2256_s29 }
  0x88   : > { %v984_v5 = vpop.permute.xlu0 %983 }
  0x89   : > { %v766_v7 = vpop.permute.xlu1 %765 }
  0x8b   : > { %1145 = vrot.lane.b32.xlu0 %v566_v55, %s2257_s9  ;;  %1147 = vrot.lane.b32.xlu1 %v578_v6, %s2257_s9 }
  0x8d   : > { %v652_v10 = vpop.permute.xlu0 %651  ;;  %v768_v48 = vpop.permute.xlu1 %767 }
  0x8e   : > { %700 = vst.msk [vmem:[#allocation2] sm:$0xff] %vm699_vm4, %v652_v10  ;;  %v754_v10 = vrot.slane %v2232_v59, 1 }
  0x8f   : > { %814 = vst.msk [vmem:[#allocation2] sm:$0xff] %vm813_vm5, %v766_v7  ;;  %1213 = vrot.lane.b32.xlu0 %v743_v61, %s2258_s10  ;;  %667 = vrot.lane.b32.xlu1 %v566_v55, %s2254_s27 }
  0x90   : > { %884 = vst.msk [vmem:[#allocation2] sm:$0xff] %vm883_vm6, %v836_v1  ;;  %v755_v14 = vsel %vm716_vm0, %v753_v9, %v754_v10  ;;  %v2239_v9 = vld [vmem:[%s2303_s23 + $0xc0] sm:$0xff]  }
  0x91   : > { %v654_v12 = vpop.permute.xlu0 %653  ;;  %v986_v16 = vpop.permute.xlu1 %985 }
  0x92   : > { %701 = vst.msk [vmem:[#allocation2 + $0x8] sm:$0xff] %vm699_vm4, %v654_v12 }
  0x93   : > { %815 = vst.msk [vmem:[#allocation2 + $0x8] sm:$0xff] %vm813_vm5, %v768_v48  ;;  %1215 = vrot.lane.b32.xlu0 %v746_v11, %s2258_s10  ;;  %669 = vrot.lane.b32.xlu1 %v578_v6, %s2254_s27  ;;  %v2234_v48 = vld [vmem:[%s2303_s23 + $0xa4] ss:$0 sps:$4 sm:$0x11]  }
  0x94   : > { %885 = vst.msk [vmem:[#allocation2 + $0x8] sm:$0xff] %vm883_vm6, %v838_v0  ;;  %v611_v0 = vshll.u32 %v2232_v59, 16 }
  0x95   : > { %v916_v17 = vpop.permute.xlu0 %915  ;;  %v918_v21 = vpop.permute.xlu1 %917 }
  0x96   : > { %964 = vst.msk [vmem:[#allocation2] sm:$0xff] %vm963_vm7, %v916_v17  ;;  %965 = vst.msk [vmem:[#allocation2 + $0x8] sm:$0xff] %vm963_vm7, %v918_v21  ;;  %v623_v17 = vshll.u32 %v2234_v48, 16 }
  0x97   : > { %781 = vrot.lane.b32.xlu0 %v743_v61, %s2253_s26  ;;  %1032 = vst.msk [vmem:[#allocation2] sm:$0xff] %vm1031_vm8, %v984_v5  ;;  %783 = vrot.lane.b32.xlu1 %v746_v11, %s2253_s26  ;;  %1033 = vst.msk [vmem:[#allocation2 + $0x8] sm:$0xff] %vm1031_vm8, %v986_v16  ;;  %v613_v5 = vrot.slane %v611_v0, 1 }
  0x98   : > { %v625_v21 = vrot.slane %v623_v17, 1 }
  0x99   : > { %v1054_v22 = vpop.permute.xlu0 %1053  ;;  %v1056_v26 = vpop.permute.xlu1 %1055  ;;  %v614_v8 = vsel %vm458_vm1, %v609_v4, %v613_v5 }
  0x9a   : > { %1102 = vst.msk [vmem:[#allocation2] sm:$0xff] %vm1101_vm9, %v1054_v22  ;;  %1103 = vst.msk [vmem:[#allocation2 + $0x8] sm:$0xff] %vm1101_vm9, %v1056_v26 }
  0x9b   : > { %851 = vrot.lane.b32.xlu0 %v2367_v49, %s2251_s24  ;;  %853 = vrot.lane.b32.xlu1 %v2372_v50, %s2251_s24 }
  0x9d   : > { %v1134_v27 = vpop.permute.xlu0 %1133  ;;  %v1136_v35 = vpop.permute.xlu1 %1135 }
  0x9e   : > { %1182 = vst.msk [vmem:[#allocation2] sm:$0xff] %vm1181_vm10, %v1134_v27  ;;  %1183 = vst.msk [vmem:[#allocation2 + $0x8] sm:$0xff] %vm1181_vm10, %v1136_v35 }
  0x9f   : > { %931 = vrot.lane.b32.xlu0 %v578_v6, %s2255_s28  ;;  %933 = vrot.lane.b32.xlu1 %v590_v28, %s2255_s28 }
  0xa1   : > { %v1202_v49 = vpop.permute.xlu0 %1201  ;;  %v656_v40 = vpop.permute.xlu1 %655 }
  0xa2   : > { %1250 = vst.msk [vmem:[#allocation2] sm:$0xff] %vm1249_vm11, %v1202_v49  ;;  %v2236_v49 = vld [vmem:[%s2303_s23 + $0xb0] ss:$0 sps:$4 sm:$0x11]  }
  0xa3   : > { %702 = vst.msk [vmem:[#allocation2 + $0x10] sm:$0xff] %vm699_vm4, %v656_v40  ;;  %999 = vrot.lane.b32.xlu0 %v746_v11, %s2252_s25  ;;  %1001 = vrot.lane.b32.xlu1 %v749_v36, %s2252_s25  ;;  %v618_v11 = vshll.u32 %v2432_v13, 16 }
  0xa5   : > { %v1204_v41 = vpop.permute.xlu0 %1203  ;;  %v658_v44 = vpop.permute.xlu1 %657  ;;  %v620_v16 = vrot.slane %v618_v11, 1 }
  0xa6   : > { %1251 = vst.msk [vmem:[#allocation2 + $0x8] sm:$0xff] %vm1249_vm11, %v1204_v41  ;;  %v635_v41 = vshll.u32 %v2236_v49, 16 }
  0xa7   : > { %703 = vst.msk [vmem:[#allocation2 + $0x18] sm:$0xff] %vm699_vm4, %v658_v44  ;;  %1069 = vrot.lane.b32.xlu0 %v2372_v50, %s2256_s29  ;;  %1071 = vrot.lane.b32.xlu1 %v2395_v56, %s2256_s29  ;;  %v750_v50 = vrot.slane %v2395_v56, 1  ;;  %v621_v20 = vor.u32 %v620_v16, %v616_v15  ;;  %v904_v16 = vshrl.u32 %v2239_v9, 16 }
  0xa9   : > { %v770_v46 = vpop.permute.xlu0 %769  ;;  %v1266_v34 = vld [vmem:[#allocation2] sm:$0xff]  ;;  %v772_v51 = vpop.permute.xlu1 %771  ;;  %v752_v57 = vsel %vm716_vm0, %v750_v50, %v751_v52  ;;  %v626_v26 = vsel %vm458_vm1, %v621_v20, %v625_v21  ;;  %v759_v50 = vrot.slane %v2455_v25, 1  ;;  %v760_v52 = vrot.slane %v2236_v49, 1 }
  0xaa   : > { %816 = vst.msk [vmem:[#allocation2 + $0x10] sm:$0xff] %vm813_vm5, %v770_v46  ;;  %2147 = vmatprep.mubr.msk.bf16.mxu0 %vm1309_vm12, %v1266_v34  ;;  %817 = vst.msk [vmem:[#allocation2 + $0x18] sm:$0xff] %vm813_vm5, %v772_v51  ;;  %v637_v46 = vrot.slane %v635_v41, 1 }
  0xab   : > { %1149 = vrot.lane.b32.xlu0 %v590_v28, %s2257_s9  ;;  %1151 = vrot.lane.b32.xlu1 %v602_v47, %s2257_s9 }
  0xad   : > { %v840_v53 = vpop.permute.xlu0 %839  ;;  %v1267_v54 = vld [vmem:[#allocation2 + $0x8] sm:$0xff]  ;;  %v842_v55 = vpop.permute.xlu1 %841 }
  0xae   : > { %886 = vst.msk [vmem:[#allocation2 + $0x10] sm:$0xff] %vm883_vm6, %v840_v53  ;;  %2148 = vmatmul.mubr.msk.bf16.vlgmr.msra.gmra.mrb[0].mxu0 %vm1309_vm12, %v1267_v54  ;;  %887 = vst.msk [vmem:[#allocation2 + $0x18] sm:$0xff] %vm883_vm6, %v842_v55  ;;  %v2238_v53 = vld [vmem:[%s2303_s23 + $0xbc] ss:$0 sps:$4 sm:$0x11]   ;;  %v642_v54 = vshll.u32 %v2474_v38, 16 }
  0xaf   : > { %1217 = vrot.lane.b32.xlu0 %v749_v36, %s2258_s10  ;;  %671 = vrot.lane.b32.xlu1 %v590_v28, %s2254_s27  ;;  %v757_v28 = vrot.slane %v2234_v48, 1  ;;  %v647_v60 = vshll.u32 %v2238_v53, 16 }
  0xb0   : > { %v644_v59 = vrot.slane %v642_v54, 1 }
  0xb1   : > { %v920_v58 = vpop.permute.xlu0 %919  ;;  %v922_v61 = vpop.permute.xlu1 %921  ;;  %v649_v63 = vrot.slane %v647_v60, 1 }
  0xb2   : > { %966 = vst.msk [vmem:[#allocation2 + $0x10] sm:$0xff] %vm963_vm7, %v920_v58  ;;  %967 = vst.msk [vmem:[#allocation2 + $0x18] sm:$0xff] %vm963_vm7, %v922_v61  ;;  %v640_v58 = vshrl.u32 %v2474_v38, 16 }
  0xb3   : > { %1219 = vrot.lane.b32.xlu0 %v752_v57, %s2258_s10  ;;  %673 = vrot.lane.b32.xlu1 %v602_v47, %s2254_s27 }
  0xb4   : > { %v645_v45 = vor.u32 %v644_v59, %v640_v58 }
  0xb5   : > { %v988_v62 = vpop.permute.xlu0 %987  ;;  %v990_v1 = vpop.permute.xlu1 %989 }
  0xb6   : > { %1034 = vst.msk [vmem:[#allocation2 + $0x10] sm:$0xff] %vm1031_vm8, %v988_v62  ;;  %1035 = vst.msk [vmem:[#allocation2 + $0x18] sm:$0xff] %vm1031_vm8, %v990_v1  ;;  %v650_v4 = vsel %vm458_vm1, %v645_v45, %v649_v63 }
  0xb7   : > { %785 = vrot.lane.b32.xlu0 %v749_v36, %s2253_s26  ;;  %787 = vrot.lane.b32.xlu1 %v752_v57, %s2253_s26  ;;  %v630_v36 = vshll.u32 %v2455_v25, 16 }
  0xb9   : > { %v1058_v3 = vpop.permute.xlu0 %1057  ;;  %v1060_v6 = vpop.permute.xlu1 %1059  ;;  %v632_v40 = vrot.slane %v630_v36, 1 }
  0xba   : > { %1104 = vst.msk [vmem:[#allocation2 + $0x10] sm:$0xff] %vm1101_vm9, %v1058_v3  ;;  %1105 = vst.msk [vmem:[#allocation2 + $0x18] sm:$0xff] %vm1101_vm9, %v1060_v6  ;;  %v763_v6 = vrot.slane %v2238_v53, 1 }
  0xbb   : > { %855 = vrot.lane.b32.xlu0 %v2395_v56, %s2251_s24  ;;  %857 = vrot.lane.b32.xlu1 %v2413_v2, %s2251_s24  ;;  %v633_v44 = vor.u32 %v632_v40, %v628_v39 }
  0xbd   : > { %v1138_v7 = vpop.permute.xlu0 %1137  ;;  %v1140_v12 = vpop.permute.xlu1 %1139  ;;  %v638_v51 = vsel %vm458_vm1, %v633_v44, %v637_v46 }
  0xbe   : > { %1184 = vst.msk [vmem:[#allocation2 + $0x10] sm:$0xff] %vm1181_vm10, %v1138_v7  ;;  %1185 = vst.msk [vmem:[#allocation2 + $0x18] sm:$0xff] %vm1181_vm10, %v1140_v12  ;;  %v2240_v12 = vld [vmem:[%s2303_s23 + $0xc8] ss:$0 sps:$4 sm:$0x11]  }
  0xbf   : > { %935 = vrot.lane.b32.xlu0 %v602_v47, %s2255_s28  ;;  %937 = vrot.lane.b32.xlu1 %v614_v8, %s2255_s28 }
  0xc1   : > { %v1206_v56 = vpop.permute.xlu0 %1205  ;;  %v660_v18 = vpop.permute.xlu1 %659 }
  0xc2   : > { %1252 = vst.msk [vmem:[#allocation2 + $0x10] sm:$0xff] %vm1249_vm11, %v1206_v56  ;;  %v906_v56 = vshll.u32 %v2239_v9, 16 }
  0xc3   : > { %704 = vst.msk [vmem:[#allocation2 + $0x20] sm:$0xff] %vm699_vm4, %v660_v18  ;;  %1003 = vrot.lane.b32.xlu0 %v752_v57, %s2252_s25  ;;  %1005 = vrot.lane.b32.xlu1 %v755_v14, %s2252_s25  ;;  %v761_v57 = vsel %vm716_vm0, %v759_v50, %v760_v52  ;;  %v911_v18 = vshll.u32 %v2240_v12, 16 }
  0xc4   : > { %v908_v17 = vrot.slane %v906_v56, 1 }
  0xc5   : > { %v1208_v19 = vpop.permute.xlu0 %1207  ;;  %v662_v22 = vpop.permute.xlu1 %661 }
  0xc6   : > { %1253 = vst.msk [vmem:[#allocation2 + $0x18] sm:$0xff] %vm1249_vm11, %v1208_v19  ;;  %v909_v21 = vor.u32 %v908_v17, %v904_v16 }
  0xc7   : > { %705 = vst.msk [vmem:[#allocation2 + $0x28] sm:$0xff] %vm699_vm4, %v662_v22  ;;  %1073 = vrot.lane.b32.xlu0 %v2413_v2, %s2256_s29  ;;  %1075 = vrot.lane.b32.xlu1 %v2432_v13, %s2256_s29  ;;  %v756_v2 = vrot.slane %v2432_v13, 1  ;;  %v913_v22 = vrot.slane %v911_v18, 1 }
  0xc9   : > { %v774_v23 = vpop.permute.xlu0 %773  ;;  %v1268_v24 = vld [vmem:[#allocation2 + $0x10] sm:$0xff]  ;;  %v776_v27 = vpop.permute.xlu1 %775  ;;  %v758_v33 = vsel %vm716_vm0, %v756_v2, %v757_v28  ;;  %v980_v2 = vrot.slane %v2239_v9, 1  ;;  %v981_v28 = vrot.slane %v2240_v12, 1 }
  0xca   : > { %818 = vst.msk [vmem:[#allocation2 + $0x20] sm:$0xff] %vm813_vm5, %v774_v23  ;;  %2151 = vmatprep.mubr.msk.bf16.mxu0 %vm1309_vm12, %v1268_v24  ;;  %819 = vst.msk [vmem:[#allocation2 + $0x28] sm:$0xff] %vm813_vm5, %v776_v27  ;;  %v2241_v23 = vld [vmem:[%s2303_s23 + $0xcc] sm:$0xff]   ;;  %v914_v27 = vsel %vm458_vm1, %v909_v21, %v913_v22 }
  0xcb   : > { %1153 = vrot.lane.b32.xlu0 %v614_v8, %s2257_s9  ;;  %1155 = vrot.lane.b32.xlu1 %v626_v26, %s2257_s9  ;;  %v1198_v46 = vrot.slane %v2241_v23, 1 }
  0xcd   : > { %v844_v29 = vpop.permute.xlu0 %843  ;;  %v1269_v30 = vld [vmem:[#allocation2 + $0x18] sm:$0xff]  ;;  %v846_v31 = vpop.permute.xlu1 %845 }
  0xce   : > { %888 = vst.msk [vmem:[#allocation2 + $0x20] sm:$0xff] %vm883_vm6, %v844_v29  ;;  %2152 = vmatmul.mubr.msk.bf16.gmra.mrb[4].mxu0 %vm1309_vm12, %v1269_v30  ;;  %889 = vst.msk [vmem:[#allocation2 + $0x28] sm:$0xff] %vm883_vm6, %v846_v31  ;;  %v2242_v29 = vld [vmem:[%s2303_s23 + $0xd4] ss:$0 sps:$4 sm:$0x11]   ;;  %v1124_v30 = vshll.u32 %v2241_v23, 16  ;;  %s238_s23 = scalar_lea.vmem %s2860_s4, %s2863_s19 }
  0xcf   : > { %1221 = vrot.lane.b32.xlu0 %v755_v14, %s2258_s10  ;;  %675 = vrot.lane.b32.xlu1 %v614_v8, %s2254_s27  ;;  %v1129_v36 = vshll.u32 %v2242_v29, 16 }
  0xd0   : > { %v1126_v49 = vrot.slane %v1124_v30, 1 }
  0xd1   : > { %v924_v35 = vpop.permute.xlu0 %923  ;;  %v926_v32 = vpop.permute.xlu1 %925  ;;  %v1131_v40 = vrot.slane %v1129_v36, 1 }
  0xd2   : > { %968 = vst.msk [vmem:[#allocation2 + $0x20] sm:$0xff] %vm963_vm7, %v924_v35  ;;  %969 = vst.msk [vmem:[#allocation2 + $0x28] sm:$0xff] %vm963_vm7, %v926_v32  ;;  %v1122_v35 = vshrl.u32 %v2241_v23, 16 }
  0xd3   : > { %1223 = vrot.lane.b32.xlu0 %v758_v33, %s2258_s10  ;;  %677 = vrot.lane.b32.xlu1 %v626_v26, %s2254_s27 }
  0xd4   : > { %v1127_v39 = vor.u32 %v1126_v49, %v1122_v35 }
  0xd5   : > { %v992_v37 = vpop.permute.xlu0 %991  ;;  %v994_v42 = vpop.permute.xlu1 %993 }
  0xd6   : > { %1036 = vst.msk [vmem:[#allocation2 + $0x20] sm:$0xff] %vm1031_vm8, %v992_v37  ;;  %1037 = vst.msk [vmem:[#allocation2 + $0x28] sm:$0xff] %vm1031_vm8, %v994_v42  ;;  %v1132_v44 = vsel %vm458_vm1, %v1127_v39, %v1131_v40 }
  0xd7   : > { %789 = vrot.lane.b32.xlu0 %v755_v14, %s2253_s26  ;;  %791 = vrot.lane.b32.xlu1 %v758_v33, %s2253_s26 }
  0xd9   : > { %v1062_v43 = vpop.permute.xlu0 %1061  ;;  %v1064_v34 = vpop.permute.xlu1 %1063 }
  0xda   : > { %1106 = vst.msk [vmem:[#allocation2 + $0x20] sm:$0xff] %vm1101_vm9, %v1062_v43  ;;  %1107 = vst.msk [vmem:[#allocation2 + $0x28] sm:$0xff] %vm1101_vm9, %v1064_v34  ;;  %v1199_v34 = vrot.slane %v2242_v29, 1 }
  0xdb   : > { %859 = vrot.lane.b32.xlu0 %v2432_v13, %s2251_s24  ;;  %861 = vrot.lane.b32.xlu1 %v2455_v25, %s2251_s24 }
  0xdc   : > { %v1200_v52 = vsel %vm716_vm0, %v1198_v46, %v1199_v34 }
  0xdd   : > { %v1142_v47 = vpop.permute.xlu0 %1141  ;;  %v1144_v55 = vpop.permute.xlu1 %1143 }
  0xde   : > { %1186 = vst.msk [vmem:[#allocation2 + $0x20] sm:$0xff] %vm1181_vm10, %v1142_v47  ;;  %1187 = vst.msk [vmem:[#allocation2 + $0x28] sm:$0xff] %vm1181_vm10, %v1144_v55 }
  0xdf   : > { %939 = vrot.lane.b32.xlu0 %v626_v26, %s2255_s28  ;;  %941 = vrot.lane.b32.xlu1 %v638_v51, %s2255_s28 }
  0xe1   : > { %v1210_v13 = vpop.permute.xlu0 %1209  ;;  %v664_v61 = vpop.permute.xlu1 %663 }
  0xe2   : > { %1254 = vst.msk [vmem:[#allocation2 + $0x20] sm:$0xff] %vm1249_vm11, %v1210_v13 }
  0xe3   : > { %706 = vst.msk [vmem:[#allocation2 + $0x30] sm:$0xff] %vm699_vm4, %v664_v61  ;;  %1007 = vrot.lane.b32.xlu0 %v758_v33, %s2252_s25  ;;  %1009 = vrot.lane.b32.xlu1 %v761_v57, %s2252_s25 }
  0xe5   : > { %v1212_v62 = vpop.permute.xlu0 %1211  ;;  %v666_v0 = vpop.permute.xlu1 %665 }
  0xe6   : > { %1255 = vst.msk [vmem:[#allocation2 + $0x28] sm:$0xff] %vm1249_vm11, %v1212_v62 }
  0xe7   : > { %707 = vst.msk [vmem:[#allocation2 + $0x38] sm:$0xff] %vm699_vm4, %v666_v0  ;;  %1077 = vrot.lane.b32.xlu0 %v2455_v25, %s2256_s29  ;;  %1079 = vrot.lane.b32.xlu1 %v2474_v38, %s2256_s29  ;;  %v762_v25 = vrot.slane %v2474_v38, 1 }
  0xe9   : > { %v778_v1 = vpop.permute.xlu0 %777  ;;  %v1270_v3 = vld [vmem:[#allocation2 + $0x20] sm:$0xff]  ;;  %v780_v5 = vpop.permute.xlu1 %779  ;;  %v764_v48 = vsel %vm716_vm0, %v762_v25, %v763_v6 }
  0xea   : > { %820 = vst.msk [vmem:[#allocation2 + $0x30] sm:$0xff] %vm813_vm5, %v778_v1  ;;  %2155 = vmatprep.mubr.msk.bf16.mxu0 %vm1309_vm12, %v1270_v3  ;;  %821 = vst.msk [vmem:[#allocation2 + $0x38] sm:$0xff] %vm813_vm5, %v780_v5 }
  0xeb   : > { %1157 = vrot.lane.b32.xlu0 %v638_v51, %s2257_s9  ;;  %1159 = vrot.lane.b32.xlu1 %v650_v4, %s2257_s9 }
  0xed   : > { %v848_v7 = vpop.permute.xlu0 %847  ;;  %v1271_v8 = vld [vmem:[#allocation2 + $0x28] sm:$0xff]  ;;  %v850_v10 = vpop.permute.xlu1 %849 }
  0xee   : > { %890 = vst.msk [vmem:[#allocation2 + $0x30] sm:$0xff] %vm883_vm6, %v848_v7  ;;  %2156 = vmatmul.mubr.msk.bf16.gmra.mrb[8].mxu0 %vm1309_vm12, %v1271_v8  ;;  %891 = vst.msk [vmem:[#allocation2 + $0x38] sm:$0xff] %vm883_vm6, %v850_v10 }
  0xef   : > { %1225 = vrot.lane.b32.xlu0 %v761_v57, %s2258_s10  ;;  %679 = vrot.lane.b32.xlu1 %v638_v51, %s2254_s27 }
  0xf1   : > { %v928_v11 = vpop.permute.xlu0 %927  ;;  %v930_v14 = vpop.permute.xlu1 %929 }
  0xf2   : > { %970 = vst.msk [vmem:[#allocation2 + $0x30] sm:$0xff] %vm963_vm7, %v928_v11  ;;  %971 = vst.msk [vmem:[#allocation2 + $0x38] sm:$0xff] %vm963_vm7, %v930_v14 }
  0xf3   : > { %1227 = vrot.lane.b32.xlu0 %v764_v48, %s2258_s10  ;;  %681 = vrot.lane.b32.xlu1 %v650_v4, %s2254_s27 }
  0xf5   : > { %v996_v15 = vpop.permute.xlu0 %995  ;;  %v998_v19 = vpop.permute.xlu1 %997 }
  0xf6   : > { %1038 = vst.msk [vmem:[#allocation2 + $0x30] sm:$0xff] %vm1031_vm8, %v996_v15  ;;  %1039 = vst.msk [vmem:[#allocation2 + $0x38] sm:$0xff] %vm1031_vm8, %v998_v19 }
  0xf7   : > { %793 = vrot.lane.b32.xlu0 %v761_v57, %s2253_s26  ;;  %795 = vrot.lane.b32.xlu1 %v764_v48, %s2253_s26  ;;  %s241_s26 = scalar_lea.vmem %s2861_s5, %s2863_s19 }
  0xf9   : > { %v1066_v20 = vpop.permute.xlu0 %1065  ;;  %v1068_v24 = vpop.permute.xlu1 %1067 }
  0xfa   : > { %1108 = vst.msk [vmem:[#allocation2 + $0x30] sm:$0xff] %vm1101_vm9, %v1066_v20  ;;  %1109 = vst.msk [vmem:[#allocation2 + $0x38] sm:$0xff] %vm1101_vm9, %v1068_v24 }
  0xfb   : > { %863 = vrot.lane.b32.xlu0 %v2474_v38, %s2251_s24  ;;  %865 = vrot.lane.b32.xlu1 %v2239_v9, %s2251_s24  ;;  %v982_v38 = vsel %vm716_vm0, %v980_v2, %v981_v28 }
  0xfd   : > { %v1146_v26 = vpop.permute.xlu0 %1145  ;;  %v1148_v31 = vpop.permute.xlu1 %1147 }
  0xfe   : > { %1188 = vst.msk [vmem:[#allocation2 + $0x30] sm:$0xff] %vm1181_vm10, %v1146_v26  ;;  %1189 = vst.msk [vmem:[#allocation2 + $0x38] sm:$0xff] %vm1181_vm10, %v1148_v31 }
  0xff   : > { %943 = vrot.lane.b32.xlu0 %v650_v4, %s2255_s28  ;;  %945 = vrot.lane.b32.xlu1 %v914_v27, %s2255_s28 }
 0x101   : > { %v1214_v33 = vpop.permute.xlu0 %1213  ;;  %v668_v32 = vpop.permute.xlu1 %667 }
 0x102   : > { %1256 = vst.msk [vmem:[#allocation2 + $0x30] sm:$0xff] %vm1249_vm11, %v1214_v33 }
 0x103   : > { %708 = vst.msk [vmem:[#allocation2 + $0x40] sm:$0xff] %vm699_vm4, %v668_v32  ;;  %1011 = vrot.lane.b32.xlu0 %v764_v48, %s2252_s25  ;;  %1013 = vrot.lane.b32.xlu1 %v982_v38, %s2252_s25 }
 0x105   : > { %v1216_v37 = vpop.permute.xlu0 %1215  ;;  %v670_v41 = vpop.permute.xlu1 %669 }
 0x106   : > { %1257 = vst.msk [vmem:[#allocation2 + $0x38] sm:$0xff] %vm1249_vm11, %v1216_v37 }
 0x107   : > { %709 = vst.msk [vmem:[#allocation2 + $0x48] sm:$0xff] %vm699_vm4, %v670_v41  ;;  %1081 = vrot.lane.b32.xlu0 %v2239_v9, %s2256_s29  ;;  %1083 = vrot.lane.b32.xlu1 %v2241_v23, %s2256_s29 }
 0x109   : > { %v782_v42 = vpop.permute.xlu0 %781  ;;  %v1272_v43 = vld [vmem:[#allocation2 + $0x30] sm:$0xff]  ;;  %v784_v47 = vpop.permute.xlu1 %783 }
 0x10a   : > { %822 = vst.msk [vmem:[#allocation2 + $0x40] sm:$0xff] %vm813_vm5, %v782_v42  ;;  %2159 = vmatprep.mubr.msk.bf16.mxu0 %vm1309_vm12, %v1272_v43  ;;  %823 = vst.msk [vmem:[#allocation2 + $0x48] sm:$0xff] %vm813_vm5, %v784_v47 }
 0x10b   : > { %1161 = vrot.lane.b32.xlu0 %v914_v27, %s2257_s9  ;;  %1163 = vrot.lane.b32.xlu1 %v1132_v44, %s2257_s9 }
 0x10d   : > { %v852_v51 = vpop.permute.xlu0 %851  ;;  %v1273_v50 = vld [vmem:[#allocation2 + $0x38] sm:$0xff]  ;;  %v854_v53 = vpop.permute.xlu1 %853 }
 0x10e   : > { %892 = vst.msk [vmem:[#allocation2 + $0x40] sm:$0xff] %vm883_vm6, %v852_v51  ;;  %2160 = vmatmul.mubr.msk.bf16.gmra.mrb[12].mxu0 %vm1309_vm12, %v1273_v50  ;;  %893 = vst.msk [vmem:[#allocation2 + $0x48] sm:$0xff] %vm883_vm6, %v854_v53 }
 0x10f   : > { %1229 = vrot.lane.b32.xlu0 %v982_v38, %s2258_s10  ;;  %1231 = vrot.lane.b32.xlu1 %v1200_v52, %s2258_s10  ;;  %v2785_v52 = vld [vmem:[%s2858_s2] ss:$0 sm:$0xff] }
 0x111   : > { %v932_v54 = vpop.permute.xlu0 %931  ;;  %v934_v55 = vpop.permute.xlu1 %933 }
 0x112   : > { %972 = vst.msk [vmem:[#allocation2 + $0x40] sm:$0xff] %vm963_vm7, %v932_v54  ;;  %973 = vst.msk [vmem:[#allocation2 + $0x48] sm:$0xff] %vm963_vm7, %v934_v55 }
 0x115   : > { %v1000_v13 = vpop.permute.xlu0 %999  ;;  %v1002_v57 = vpop.permute.xlu1 %1001 }
 0x116   : > { %1040 = vst.msk [vmem:[#allocation2 + $0x40] sm:$0xff] %vm1031_vm8, %v1000_v13  ;;  %1041 = vst.msk [vmem:[#allocation2 + $0x48] sm:$0xff] %vm1031_vm8, %v1002_v57 }
 0x119   : > { %v1070_v58 = vpop.permute.xlu0 %1069  ;;  %v1072_v59 = vpop.permute.xlu1 %1071 }
 0x11a   : > { %1110 = vst.msk [vmem:[#allocation2 + $0x40] sm:$0xff] %vm1101_vm9, %v1070_v58  ;;  %1111 = vst.msk [vmem:[#allocation2 + $0x48] sm:$0xff] %vm1101_vm9, %v1072_v59 }
 0x11d   : > { %v1150_v60 = vpop.permute.xlu0 %1149  ;;  %v1152_v61 = vpop.permute.xlu1 %1151 }
 0x11e   : > { %1190 = vst.msk [vmem:[#allocation2 + $0x40] sm:$0xff] %vm1181_vm10, %v1150_v60  ;;  %1191 = vst.msk [vmem:[#allocation2 + $0x48] sm:$0xff] %vm1181_vm10, %v1152_v61 }
 0x121   : > { %v1218_v62 = vpop.permute.xlu0 %1217  ;;  %v672_v45 = vpop.permute.xlu1 %671 }
 0x122   : > { %1258 = vst.msk [vmem:[#allocation2 + $0x40] sm:$0xff] %vm1249_vm11, %v1218_v62 }
 0x123   : > { %710 = vst.msk [vmem:[#allocation2 + $0x50] sm:$0xff] %vm699_vm4, %v672_v45 }
 0x125   : > { %v1220_v63 = vpop.permute.xlu0 %1219  ;;  %v674_v0 = vpop.permute.xlu1 %673 }
 0x126   : > { %1259 = vst.msk [vmem:[#allocation2 + $0x48] sm:$0xff] %vm1249_vm11, %v1220_v63 }
 0x127   : > { %711 = vst.msk [vmem:[#allocation2 + $0x58] sm:$0xff] %vm699_vm4, %v674_v0 }
 0x129   : > { %v786_v1 = vpop.permute.xlu0 %785  ;;  %v1274_v3 = vld [vmem:[#allocation2 + $0x40] sm:$0xff]  ;;  %v788_v4 = vpop.permute.xlu1 %787 }
 0x12a   : > { %824 = vst.msk [vmem:[#allocation2 + $0x50] sm:$0xff] %vm813_vm5, %v786_v1  ;;  %2163 = vmatprep.mubr.msk.bf16.mxu1 %vm1309_vm12, %v1274_v3  ;;  %825 = vst.msk [vmem:[#allocation2 + $0x58] sm:$0xff] %vm813_vm5, %v788_v4 }
 0x12d   : > { %v856_v5 = vpop.permute.xlu0 %855  ;;  %v1275_v25 = vld [vmem:[#allocation2 + $0x48] sm:$0xff]  ;;  %v858_v6 = vpop.permute.xlu1 %857 }
 0x12e   : > { %894 = vst.msk [vmem:[#allocation2 + $0x50] sm:$0xff] %vm883_vm6, %v856_v5  ;;  %2164 = vmatmul.mubr.msk.bf16.vlgmr.msra.gmra.mrb[0].mxu1 %vm1309_vm12, %v1275_v25  ;;  %895 = vst.msk [vmem:[#allocation2 + $0x58] sm:$0xff] %vm883_vm6, %v858_v6 }
 0x131   : > { %v936_v7 = vpop.permute.xlu0 %935  ;;  %v938_v8 = vpop.permute.xlu1 %937 }
 0x132   : > { %974 = vst.msk [vmem:[#allocation2 + $0x50] sm:$0xff] %vm963_vm7, %v936_v7  ;;  %975 = vst.msk [vmem:[#allocation2 + $0x58] sm:$0xff] %vm963_vm7, %v938_v8 }
 0x135   : > { %v1004_v9 = vpop.permute.xlu0 %1003  ;;  %v1006_v10 = vpop.permute.xlu1 %1005 }
 0x136   : > { %1042 = vst.msk [vmem:[#allocation2 + $0x50] sm:$0xff] %vm1031_vm8, %v1004_v9  ;;  %1043 = vst.msk [vmem:[#allocation2 + $0x58] sm:$0xff] %vm1031_vm8, %v1006_v10 }
 0x139   : > { %v1074_v48 = vpop.permute.xlu0 %1073  ;;  %v1076_v11 = vpop.permute.xlu1 %1075 }
 0x13a   : > { %1112 = vst.msk [vmem:[#allocation2 + $0x50] sm:$0xff] %vm1101_vm9, %v1074_v48  ;;  %1113 = vst.msk [vmem:[#allocation2 + $0x58] sm:$0xff] %vm1101_vm9, %v1076_v11 }
 0x13d   : > { %v1154_v12 = vpop.permute.xlu0 %1153  ;;  %v1156_v56 = vpop.permute.xlu1 %1155 }
 0x13e   : > { %1192 = vst.msk [vmem:[#allocation2 + $0x50] sm:$0xff] %vm1181_vm10, %v1154_v12  ;;  %1193 = vst.msk [vmem:[#allocation2 + $0x58] sm:$0xff] %vm1181_vm10, %v1156_v56 }
 0x141   : > { %v1222_v14 = vpop.permute.xlu0 %1221  ;;  %v676_v15 = vpop.permute.xlu1 %675 }
 0x142   : > { %1260 = vst.msk [vmem:[#allocation2 + $0x50] sm:$0xff] %vm1249_vm11, %v1222_v14 }
 0x143   : > { %712 = vst.msk [vmem:[#allocation2 + $0x60] sm:$0xff] %vm699_vm4, %v676_v15 }
 0x145   : > { %v1224_v16 = vpop.permute.xlu0 %1223  ;;  %v678_v17 = vpop.permute.xlu1 %677 }
 0x146   : > { %1261 = vst.msk [vmem:[#allocation2 + $0x58] sm:$0xff] %vm1249_vm11, %v1224_v16 }
 0x147   : > { %713 = vst.msk [vmem:[#allocation2 + $0x68] sm:$0xff] %vm699_vm4, %v678_v17 }
 0x149   : > { %v790_v18 = vpop.permute.xlu0 %789  ;;  %v1276_v19 = vld [vmem:[#allocation2 + $0x50] sm:$0xff]  ;;  %v792_v20 = vpop.permute.xlu1 %791 }
 0x14a   : > { %826 = vst.msk [vmem:[#allocation2 + $0x60] sm:$0xff] %vm813_vm5, %v790_v18  ;;  %2167 = vmatprep.mubr.msk.bf16.mxu1 %vm1309_vm12, %v1276_v19  ;;  %827 = vst.msk [vmem:[#allocation2 + $0x68] sm:$0xff] %vm813_vm5, %v792_v20 }
 0x14d   : > { %v860_v21 = vpop.permute.xlu0 %859  ;;  %v1277_v22 = vld [vmem:[#allocation2 + $0x58] sm:$0xff]  ;;  %v862_v23 = vpop.permute.xlu1 %861 }
 0x14e   : > { %896 = vst.msk [vmem:[#allocation2 + $0x60] sm:$0xff] %vm883_vm6, %v860_v21  ;;  %2168 = vmatmul.mubr.msk.bf16.gmra.mrb[4].mxu1 %vm1309_vm12, %v1277_v22  ;;  %897 = vst.msk [vmem:[#allocation2 + $0x68] sm:$0xff] %vm883_vm6, %v862_v23 }
 0x151   : > { %v940_v24 = vpop.permute.xlu0 %939  ;;  %v942_v26 = vpop.permute.xlu1 %941 }
 0x152   : > { %976 = vst.msk [vmem:[#allocation2 + $0x60] sm:$0xff] %vm963_vm7, %v940_v24  ;;  %977 = vst.msk [vmem:[#allocation2 + $0x68] sm:$0xff] %vm963_vm7, %v942_v26 }
 0x155   : > { %v1008_v27 = vpop.permute.xlu0 %1007  ;;  %v1010_v2 = vpop.permute.xlu1 %1009 }
 0x156   : > { %1044 = vst.msk [vmem:[#allocation2 + $0x60] sm:$0xff] %vm1031_vm8, %v1008_v27  ;;  %1045 = vst.msk [vmem:[#allocation2 + $0x68] sm:$0xff] %vm1031_vm8, %v1010_v2 }
 0x159   : > { %v1078_v28 = vpop.permute.xlu0 %1077  ;;  %v1080_v29 = vpop.permute.xlu1 %1079 }
 0x15a   : > { %1114 = vst.msk [vmem:[#allocation2 + $0x60] sm:$0xff] %vm1101_vm9, %v1078_v28  ;;  %1115 = vst.msk [vmem:[#allocation2 + $0x68] sm:$0xff] %vm1101_vm9, %v1080_v29 }
 0x15d   : > { %v1158_v30 = vpop.permute.xlu0 %1157  ;;  %v1160_v31 = vpop.permute.xlu1 %1159 }
 0x15e   : > { %1194 = vst.msk [vmem:[#allocation2 + $0x60] sm:$0xff] %vm1181_vm10, %v1158_v30  ;;  %1195 = vst.msk [vmem:[#allocation2 + $0x68] sm:$0xff] %vm1181_vm10, %v1160_v31 }
 0x161   : > { %v1226_v33 = vpop.permute.xlu0 %1225  ;;  %v680_v38 = vpop.permute.xlu1 %679 }
 0x162   : > { %1262 = vst.msk [vmem:[#allocation2 + $0x60] sm:$0xff] %vm1249_vm11, %v1226_v33 }
 0x163   : > { %714 = vst.msk [vmem:[#allocation2 + $0x70] sm:$0xff] %vm699_vm4, %v680_v38 }
 0x165   : > { %v1228_v35 = vpop.permute.xlu0 %1227  ;;  %v682_v49 = vpop.permute.xlu1 %681 }
 0x166   : > { %1263 = vst.msk [vmem:[#allocation2 + $0x68] sm:$0xff] %vm1249_vm11, %v1228_v35 }
 0x167   : > { %715 = vst.msk [vmem:[#allocation2 + $0x78] sm:$0xff] %vm699_vm4, %v682_v49 }
 0x169   : > { %v794_v36 = vpop.permute.xlu0 %793  ;;  %v1278_v32 = vld [vmem:[#allocation2 + $0x60] sm:$0xff]  ;;  %v796_v37 = vpop.permute.xlu1 %795 }
 0x16a   : > { %828 = vst.msk [vmem:[#allocation2 + $0x70] sm:$0xff] %vm813_vm5, %v794_v36  ;;  %2171 = vmatprep.mubr.msk.bf16.mxu1 %vm1309_vm12, %v1278_v32  ;;  %829 = vst.msk [vmem:[#allocation2 + $0x78] sm:$0xff] %vm813_vm5, %v796_v37 }
 0x16d   : > { %v864_v39 = vpop.permute.xlu0 %863  ;;  %v1279_v40 = vld [vmem:[#allocation2 + $0x68] sm:$0xff]  ;;  %v866_v41 = vpop.permute.xlu1 %865 }
 0x16e   : > { %898 = vst.msk [vmem:[#allocation2 + $0x70] sm:$0xff] %vm883_vm6, %v864_v39  ;;  %2172 = vmatmul.mubr.msk.bf16.gmra.mrb[8].mxu1 %vm1309_vm12, %v1279_v40  ;;  %899 = vst.msk [vmem:[#allocation2 + $0x78] sm:$0xff] %vm883_vm6, %v866_v41 }
 0x171   : > { %v944_v42 = vpop.permute.xlu0 %943  ;;  %v946_v43 = vpop.permute.xlu1 %945 }
 0x172   : > { %978 = vst.msk [vmem:[#allocation2 + $0x70] sm:$0xff] %vm963_vm7, %v944_v42  ;;  %979 = vst.msk [vmem:[#allocation2 + $0x78] sm:$0xff] %vm963_vm7, %v946_v43 }
 0x175   : > { %v1012_v44 = vpop.permute.xlu0 %1011  ;;  %v1014_v46 = vpop.permute.xlu1 %1013 }
 0x176   : > { %1046 = vst.msk [vmem:[#allocation2 + $0x70] sm:$0xff] %vm1031_vm8, %v1012_v44  ;;  %1047 = vst.msk [vmem:[#allocation2 + $0x78] sm:$0xff] %vm1031_vm8, %v1014_v46 }
 0x179   : > { %v1082_v34 = vpop.permute.xlu0 %1081  ;;  %v1084_v47 = vpop.permute.xlu1 %1083 }
 0x17a   : > { %1116 = vst.msk [vmem:[#allocation2 + $0x70] sm:$0xff] %vm1101_vm9, %v1082_v34  ;;  %1117 = vst.msk [vmem:[#allocation2 + $0x78] sm:$0xff] %vm1101_vm9, %v1084_v47 }
 0x17d   : > { %v1162_v51 = vpop.permute.xlu0 %1161  ;;  %v1164_v50 = vpop.permute.xlu1 %1163 }
 0x17e   : > { %1196 = vst.msk [vmem:[#allocation2 + $0x70] sm:$0xff] %vm1181_vm10, %v1162_v51  ;;  %1197 = vst.msk [vmem:[#allocation2 + $0x78] sm:$0xff] %vm1181_vm10, %v1164_v50 }
 0x181   : > { %v1230_v53 = vpop.permute.xlu0 %1229  ;;  %v2149_v54 = vpop.f32.mrb[0].mxu0 }
 0x182   : > { %1264 = vst.msk [vmem:[#allocation2 + $0x70] sm:$0xff] %vm1249_vm11, %v1230_v53  ;;  %v1232_v55 = vpop.permute.xlu1 %1231  ;;  %v1396_v13 = vpop.f32.mrb[1].mxu0  ;;  %v1405_v59 = vadd.f32 %v2149_v54, %v2785_v52 }
 0x183   : > { %1265 = vst.msk [vmem:[#allocation2 + $0x78] sm:$0xff] %vm1249_vm11, %v1232_v55  ;;  %v1397_v57 = vadd.f32 %v2785_v52, %v1396_v13  ;;  %v2150_v58 = vpop.f32.mrb[2].mxu0 }
 0x184   : > { %v1408_v60 = vadd.f32 %v2150_v58, %v2785_v52  ;;  %v1399_v61 = vpop.f32.mrb[3].mxu0  ;;  %v1563_v4 = vmul.f32 %v1405_v59, %v1405_v59 }
 0x185   : > { %v1400_v62 = vadd.f32 %v2785_v52, %v1399_v61  ;;  %v1561_v63 = vmul.f32 %v1397_v57, %v1397_v57 }
 0x186   : > { %v2035_v45 = vpack.c.bf16 %v1408_v60, %v1405_v59  ;;  %v1564_v8 = vmul.f32 %v1408_v60, %v1408_v60 }
 0x187   : > { %v1523_v0 = vadd.f32 %v1400_v62, %v1397_v57  ;;  %v1562_v1 = vmul.f32 %v1400_v62, %v1400_v62  ;;  %v2030_v3 = vpack.c.bf16 %v1400_v62, %v1397_v57 }
 0x188   : > { %2107 = vst [vmem:[%s2796_s20 + $0x8] sm:$0xff] %v2035_v45  }
 0x189   : > { %v1524_v5 = vadd.f32 %v1523_v0, %v1405_v59  ;;  %v1593_v25 = vadd.f32 %v1562_v1, %v1561_v63  ;;  %2031 = vst [vmem:[%s2796_s20] sm:$0xff] %v2030_v3   ;;  %v1280_v6 = vld [vmem:[#allocation2 + $0x70] sm:$0xff] }
 0x18a   : > { %2175 = vmatprep.mubr.msk.bf16.mxu1 %vm1309_vm12, %v1280_v6  ;;  %v1281_v7 = vld [vmem:[#allocation2 + $0x78] sm:$0xff] }
 0x18b   : > { %v1594_v9 = vadd.f32 %v1593_v25, %v1563_v4  ;;  %2176 = vmatmul.mubr.msk.bf16.gmra.mrb[12].mxu1 %vm1309_vm12, %v1281_v7  ;;  %v1525_v10 = vadd.f32 %v1524_v5, %v1408_v60 }
 0x18d   : > { %v1595_v48 = vadd.f32 %v1594_v9, %v1564_v8 }
 0x1a1   : > { %v2153_v11 = vpop.f32.mrb[4].mxu0 }
 0x1a2   : > { %v1412_v12 = vpop.f32.mrb[5].mxu0  ;;  %v1421_v15 = vadd.f32 %v2153_v11, %v2785_v52 }
 0x1a3   : > { %v1413_v56 = vadd.f32 %v2785_v52, %v1412_v12  ;;  %v2154_v14 = vpop.f32.mrb[6].mxu0 }
 0x1a4   : > { %v1424_v16 = vadd.f32 %v2154_v14, %v2785_v52  ;;  %v1415_v17 = vpop.f32.mrb[7].mxu0  ;;  %v1567_v27 = vmul.f32 %v1421_v15, %v1421_v15 }
 0x1a5   : > { %v1526_v18 = vadd.f32 %v1525_v10, %v1413_v56  ;;  %v1565_v19 = vmul.f32 %v1413_v56, %v1413_v56  ;;  %v1416_v20 = vadd.f32 %v2785_v52, %v1415_v17 }
 0x1a6   : > { %v2045_v21 = vpack.c.bf16 %v1424_v16, %v1421_v15  ;;  %v1568_v29 = vmul.f32 %v1424_v16, %v1424_v16 }
 0x1a7   : > { %v1596_v22 = vadd.f32 %v1595_v48, %v1565_v19  ;;  %v1527_v23 = vadd.f32 %v1526_v18, %v1416_v20  ;;  %v1566_v24 = vmul.f32 %v1416_v20, %v1416_v20  ;;  %v2040_v26 = vpack.c.bf16 %v1416_v20, %v1413_v56 }
 0x1a8   : > { %2109 = vst [vmem:[%s2796_s20 + $0x18] sm:$0xff] %v2045_v21  }
 0x1a9   : > { %v1528_v2 = vadd.f32 %v1527_v23, %v1421_v15  ;;  %v1597_v28 = vadd.f32 %v1596_v22, %v1566_v24  ;;  %2108 = vst [vmem:[%s2796_s20 + $0x10] sm:$0xff] %v2040_v26  }
 0x1ab   : > { %v1598_v30 = vadd.f32 %v1597_v28, %v1567_v27  ;;  %v1529_v31 = vadd.f32 %v1528_v2, %v1424_v16 }
 0x1ad   : > { %v1599_v33 = vadd.f32 %v1598_v30, %v1568_v29 }
 0x1c1   : > { %v2157_v38 = vpop.f32.mrb[8].mxu0 }
 0x1c2   : > { %v1428_v35 = vpop.f32.mrb[9].mxu0  ;;  %v1437_v32 = vadd.f32 %v2157_v38, %v2785_v52 }
 0x1c3   : > { %v1429_v49 = vadd.f32 %v2785_v52, %v1428_v35  ;;  %v2158_v36 = vpop.f32.mrb[10].mxu0 }
 0x1c4   : > { %v1440_v37 = vadd.f32 %v2158_v36, %v2785_v52  ;;  %v1431_v39 = vpop.f32.mrb[11].mxu0  ;;  %v1571_v51 = vmul.f32 %v1437_v32, %v1437_v32 }
 0x1c5   : > { %v1530_v40 = vadd.f32 %v1529_v31, %v1429_v49  ;;  %v1569_v41 = vmul.f32 %v1429_v49, %v1429_v49  ;;  %v1432_v42 = vadd.f32 %v2785_v52, %v1431_v39 }
 0x1c6   : > { %v2055_v43 = vpack.c.bf16 %v1440_v37, %v1437_v32  ;;  %v1572_v54 = vmul.f32 %v1440_v37, %v1440_v37 }
 0x1c7   : > { %v1600_v44 = vadd.f32 %v1599_v33, %v1569_v41  ;;  %v1531_v46 = vadd.f32 %v1530_v40, %v1432_v42  ;;  %v1570_v34 = vmul.f32 %v1432_v42, %v1432_v42  ;;  %v2050_v47 = vpack.c.bf16 %v1432_v42, %v1429_v49 }
 0x1c8   : > { %2111 = vst [vmem:[%s2796_s20 + $0x28] sm:$0xff] %v2055_v43  }
 0x1c9   : > { %v1532_v50 = vadd.f32 %v1531_v46, %v1437_v32  ;;  %v1601_v53 = vadd.f32 %v1600_v44, %v1570_v34  ;;  %2110 = vst [vmem:[%s2796_s20 + $0x20] sm:$0xff] %v2050_v47  }
 0x1cb   : > { %v1602_v55 = vadd.f32 %v1601_v53, %v1571_v51  ;;  %v1533_v13 = vadd.f32 %v1532_v50, %v1440_v37 }
 0x1cd   : > { %v1603_v57 = vadd.f32 %v1602_v55, %v1572_v54 }
 0x1e1   : > { %v2161_v58 = vpop.f32.mrb[12].mxu0 }
 0x1e2   : > { %v1444_v59 = vpop.f32.mrb[13].mxu0  ;;  %v1453_v62 = vadd.f32 %v2161_v58, %v2785_v52 }
 0x1e3   : > { %v1445_v60 = vadd.f32 %v2785_v52, %v1444_v59  ;;  %v2162_v61 = vpop.f32.mrb[14].mxu0 }
 0x1e4   : > { %v1456_v45 = vadd.f32 %v2162_v61, %v2785_v52  ;;  %v1447_v63 = vpop.f32.mrb[15].mxu0  ;;  %v1575_v8 = vmul.f32 %v1453_v62, %v1453_v62 }
 0x1e5   : > { %v1534_v0 = vadd.f32 %v1533_v13, %v1445_v60  ;;  %v1573_v1 = vmul.f32 %v1445_v60, %v1445_v60  ;;  %v1448_v3 = vadd.f32 %v2785_v52, %v1447_v63 }
 0x1e6   : > { %v2065_v4 = vpack.c.bf16 %v1456_v45, %v1453_v62  ;;  %v1576_v48 = vmul.f32 %v1456_v45, %v1456_v45 }
 0x1e7   : > { %v1604_v5 = vadd.f32 %v1603_v57, %v1573_v1  ;;  %v1535_v25 = vadd.f32 %v1534_v0, %v1448_v3  ;;  %v1574_v6 = vmul.f32 %v1448_v3, %v1448_v3  ;;  %v2060_v7 = vpack.c.bf16 %v1448_v3, %v1445_v60 }
 0x1e8   : > { %2113 = vst [vmem:[%s2796_s20 + $0x38] sm:$0xff] %v2065_v4  }
 0x1e9   : > { %v1536_v9 = vadd.f32 %v1535_v25, %v1453_v62  ;;  %v1605_v10 = vadd.f32 %v1604_v5, %v1574_v6  ;;  %2112 = vst [vmem:[%s2796_s20 + $0x30] sm:$0xff] %v2060_v7  }
 0x1eb   : > { %v1606_v11 = vadd.f32 %v1605_v10, %v1575_v8  ;;  %v1537_v12 = vadd.f32 %v1536_v9, %v1456_v45 }
 0x1ed   : > { %v1607_v56 = vadd.f32 %v1606_v11, %v1576_v48 }
 0x201   : > { %v2165_v14 = vpop.f32.mrb[0].mxu1 }
 0x202   : > { %v1460_v15 = vpop.f32.mrb[1].mxu1  ;;  %v1469_v18 = vadd.f32 %v2165_v14, %v2785_v52 }
 0x203   : > { %v1461_v16 = vadd.f32 %v2785_v52, %v1460_v15  ;;  %v2166_v17 = vpop.f32.mrb[2].mxu1 }
 0x204   : > { %v1472_v19 = vadd.f32 %v2166_v17, %v2785_v52  ;;  %v1463_v20 = vpop.f32.mrb[3].mxu1  ;;  %v1579_v29 = vmul.f32 %v1469_v18, %v1469_v18 }
 0x205   : > { %v1538_v21 = vadd.f32 %v1537_v12, %v1461_v16  ;;  %v1577_v22 = vmul.f32 %v1461_v16, %v1461_v16  ;;  %v1464_v23 = vadd.f32 %v2785_v52, %v1463_v20 }
 0x206   : > { %v2075_v24 = vpack.c.bf16 %v1472_v19, %v1469_v18  ;;  %v1580_v33 = vmul.f32 %v1472_v19, %v1472_v19 }
 0x207   : > { %v1608_v26 = vadd.f32 %v1607_v56, %v1577_v22  ;;  %v1539_v27 = vadd.f32 %v1538_v21, %v1464_v23  ;;  %v1578_v2 = vmul.f32 %v1464_v23, %v1464_v23  ;;  %v2070_v28 = vpack.c.bf16 %v1464_v23, %v1461_v16 }
 0x208   : > { %2115 = vst [vmem:[%s2796_s20 + $0x48] sm:$0xff] %v2075_v24  }
 0x209   : > { %v1540_v30 = vadd.f32 %v1539_v27, %v1469_v18  ;;  %v1609_v31 = vadd.f32 %v1608_v26, %v1578_v2  ;;  %2114 = vst [vmem:[%s2796_s20 + $0x40] sm:$0xff] %v2070_v28  }
 0x20b   : > { %v1610_v38 = vadd.f32 %v1609_v31, %v1579_v29  ;;  %v1541_v35 = vadd.f32 %v1540_v30, %v1472_v19 }
 0x20d   : > { %v1611_v49 = vadd.f32 %v1610_v38, %v1580_v33 }
 0x221   : > { %v2169_v36 = vpop.f32.mrb[4].mxu1 }
 0x222   : > { %v1476_v32 = vpop.f32.mrb[5].mxu1  ;;  %v1485_v40 = vadd.f32 %v2169_v36, %v2785_v52 }
 0x223   : > { %v1477_v37 = vadd.f32 %v2785_v52, %v1476_v32  ;;  %v2170_v39 = vpop.f32.mrb[6].mxu1 }
 0x224   : > { %v1488_v41 = vadd.f32 %v2170_v39, %v2785_v52  ;;  %v1479_v42 = vpop.f32.mrb[7].mxu1  ;;  %v1583_v54 = vmul.f32 %v1485_v40, %v1485_v40 }
 0x225   : > { %v1542_v43 = vadd.f32 %v1541_v35, %v1477_v37  ;;  %v1581_v44 = vmul.f32 %v1477_v37, %v1477_v37  ;;  %v1480_v46 = vadd.f32 %v2785_v52, %v1479_v42 }
 0x226   : > { %v2085_v34 = vpack.c.bf16 %v1488_v41, %v1485_v40  ;;  %v1584_v57 = vmul.f32 %v1488_v41, %v1488_v41 }
 0x227   : > { %v1612_v47 = vadd.f32 %v1611_v49, %v1581_v44  ;;  %v1543_v51 = vadd.f32 %v1542_v43, %v1480_v46  ;;  %v1582_v50 = vmul.f32 %v1480_v46, %v1480_v46  ;;  %v2080_v53 = vpack.c.bf16 %v1480_v46, %v1477_v37 }
 0x228   : > { %2117 = vst [vmem:[%s2796_s20 + $0x58] sm:$0xff] %v2085_v34  }
 0x229   : > { %v1544_v55 = vadd.f32 %v1543_v51, %v1485_v40  ;;  %v1613_v13 = vadd.f32 %v1612_v47, %v1582_v50  ;;  %2116 = vst [vmem:[%s2796_s20 + $0x50] sm:$0xff] %v2080_v53  }
 0x22b   : > { %v1614_v58 = vadd.f32 %v1613_v13, %v1583_v54  ;;  %v1545_v59 = vadd.f32 %v1544_v55, %v1488_v41 }
 0x22d   : > { %v1615_v60 = vadd.f32 %v1614_v58, %v1584_v57 }
 0x241   : > { %v2173_v61 = vpop.f32.mrb[8].mxu1 }
 0x242   : > { %v1492_v62 = vpop.f32.mrb[9].mxu1  ;;  %v1501_v0 = vadd.f32 %v2173_v61, %v2785_v52 }
 0x243   : > { %v1493_v45 = vadd.f32 %v2785_v52, %v1492_v62  ;;  %v2174_v63 = vpop.f32.mrb[10].mxu1 }
 0x244   : > { %v1504_v1 = vadd.f32 %v2174_v63, %v2785_v52  ;;  %v1495_v3 = vpop.f32.mrb[11].mxu1  ;;  %v1587_v48 = vmul.f32 %v1501_v0, %v1501_v0 }
 0x245   : > { %v1546_v4 = vadd.f32 %v1545_v59, %v1493_v45  ;;  %v1585_v5 = vmul.f32 %v1493_v45, %v1493_v45  ;;  %v1496_v25 = vadd.f32 %v2785_v52, %v1495_v3 }
 0x246   : > { %v2095_v6 = vpack.c.bf16 %v1504_v1, %v1501_v0  ;;  %v1588_v56 = vmul.f32 %v1504_v1, %v1504_v1 }
 0x247   : > { %v1616_v7 = vadd.f32 %v1615_v60, %v1585_v5  ;;  %v1547_v8 = vadd.f32 %v1546_v4, %v1496_v25  ;;  %v1586_v9 = vmul.f32 %v1496_v25, %v1496_v25  ;;  %v2090_v10 = vpack.c.bf16 %v1496_v25, %v1493_v45 }
 0x248   : > { %2119 = vst [vmem:[%s2796_s20 + $0x68] sm:$0xff] %v2095_v6  }
 0x249   : > { %v1548_v11 = vadd.f32 %v1547_v8, %v1501_v0  ;;  %v1617_v12 = vadd.f32 %v1616_v7, %v1586_v9  ;;  %2118 = vst [vmem:[%s2796_s20 + $0x60] sm:$0xff] %v2090_v10  }
 0x24b   : > { %v1618_v14 = vadd.f32 %v1617_v12, %v1587_v48  ;;  %v1549_v15 = vadd.f32 %v1548_v11, %v1504_v1 }
 0x24d   : > { %v1619_v16 = vadd.f32 %v1618_v14, %v1588_v56 }
 0x25e   : > { %v2177_v17 = vpop.f32.mrb[12].mxu1 }
 0x25f   : > { %v1508_v18 = vpop.f32.mrb[13].mxu1  ;;  %v1517_v21 = vadd.f32 %v2177_v17, %v2785_v52 }
 0x260   : > { %v1509_v19 = vadd.f32 %v2785_v52, %v1508_v18  ;;  %v2178_v20 = vpop.f32.mrb[14].mxu1 }
 0x261   : > { %v1520_v22 = vadd.f32 %v2178_v20, %v2785_v52  ;;  %v1511_v23 = vpop.f32.mrb[15].mxu1  ;;  %v1591_v33 = vmul.f32 %v1517_v21, %v1517_v21 }
 0x262   : > { %v1550_v24 = vadd.f32 %v1549_v15, %v1509_v19  ;;  %v1589_v26 = vmul.f32 %v1509_v19, %v1509_v19  ;;  %v1512_v27 = vadd.f32 %v2785_v52, %v1511_v23 }
 0x263   : > { %v2105_v2 = vpack.c.bf16 %v1520_v22, %v1517_v21  ;;  %v1592_v49 = vmul.f32 %v1520_v22, %v1520_v22 }
 0x264   : > { %v1620_v28 = vadd.f32 %v1619_v16, %v1589_v26  ;;  %v1551_v29 = vadd.f32 %v1550_v24, %v1512_v27  ;;  %v1590_v30 = vmul.f32 %v1512_v27, %v1512_v27  ;;  %v2100_v31 = vpack.c.bf16 %v1512_v27, %v1509_v19 }
 0x265   : > { %2121 = vst [vmem:[%s2796_s20 + $0x78] sm:$0xff] %v2105_v2  }
 0x266   : > { %v1552_v38 = vadd.f32 %v1551_v29, %v1517_v21  ;;  %v1621_v35 = vadd.f32 %v1620_v28, %v1590_v30  ;;  %2120 = vst [vmem:[%s2796_s20 + $0x70] sm:$0xff] %v2100_v31  }
 0x268   : > { %v1553_v36 = vadd.f32 %v1552_v38, %v1520_v22  ;;  %v1622_v32 = vadd.f32 %v1621_v35, %v1591_v33 }
 0x26a   : > { %v1554_v37 = vrot.slane %v1553_v36, 4  ;;  %v1623_v39 = vadd.f32 %v1622_v32, %v1592_v49 }
 0x26c   : > { %v1555_v40 = vadd.f32 %v1554_v37, %v1553_v36  ;;  %v1624_v41 = vrot.slane %v1623_v39, 4 }
 0x26e   : > { %v1556_v52 = vrot.slane %v1555_v40, 2  ;;  %v1625_v42 = vadd.f32 %v1624_v41, %v1623_v39 }
 0x270   : > { %v1557_v43 = vadd.f32 %v1556_v52, %v1555_v40  ;;  %v1626_v44 = vrot.slane %v1625_v42, 2 }
 0x272   : > { %v1558_v46 = vrot.slane %v1557_v43, 1  ;;  %v1627_v34 = vadd.f32 %v1626_v44, %v1625_v42 }
 0x274   : > { %v1559_v47 = vadd.f32 %v1558_v46, %v1557_v43  ;;  %v1628_v51 = vrot.slane %v1627_v34, 1 }
 0x276   : > { %1560 = vst [vmem:[%s238_s23] sm:$0x1] %v1559_v47  ;;  %v1629_v50 = vadd.f32 %v1628_v51, %v1627_v34 }
 0x278   : > { %1630 = vst [vmem:[%s241_s26] sm:$0x1] %v1629_v50 }
 0x279 PF: > { %s16_s18 = sadd.s32 1, %s2249_s18  }
 0x27a   : > { %p13_p4 = scmp.ge.s32.totalorder %s16_s18, 4  }
 0x27c   :  { %15 = sbr.rel (!%p13_p4) target bundleno = 1 (0x1), region = 86 }

</bundles_post_ra>
